<compile_context>
chip_gen: v5e
topology: v5e:2x2
jax: 0.10.0
libtpu: 0.0.40
codegen_flags: <defaults>
</compile_context>

<pallas_src>
import functools

import jax
import jax.numpy as jnp
from jax.experimental import pallas as pl
from jax.experimental.pallas import tpu as pltpu

LANE = 128         # lane width; hidden / feature dims are zero-padded to this
NODE_ALIGN = 256   # minimum node-axis padding / tile granule


def _round_up(v, m):
    return (v + m - 1) // m * m


def _pad2(w, rows, cols):
    return jnp.zeros((rows, cols), jnp.float32).at[: w.shape[0], : w.shape[1]].set(w)


def _vmem_limit_bytes():
    """~75% of physical VMEM (v5e/v6e: 128 MiB -> 96 MiB, v7x: 64 MiB -> 48 MiB)."""
    cap = 64 * 1024 * 1024
    try:
        info = pltpu.get_tpu_info()
        cap = int(getattr(info, "vmem_capacity_bytes", cap))
    except Exception:
        cap = 64 * 1024 * 1024
    return (cap * 3) // 4


def _pick_node_tiles(n_p, two_k, nh, vmem_limit):
    """Pick (tm, tk) node tiles for one fused encoder layer.

    tk (reduction / Hs-stream tile) is made as large as n_p allows to cut Hs
    re-streaming; tm prefers 512 while keeping >= 2 row tiles so the 'parallel'
    node axis can split across both v7x TensorCores.  Both shrink if the
    double-buffered working set would exceed the per-generation VMEM budget.
    """
    tk = 256
    for cand in (1024, 512):
        if n_p % cand == 0:
            tk = cand
            break
    tm = 512 if (n_p % 512 == 0 and n_p // 512 >= 2) else 256

    def est(tm_, tk_):
        return (2 * tm_ * tk_                 # int8 A, double-buffered
                + 2 * tk_ * two_k * 2         # bf16 stacked-H, double-buffered
                + tm_ * two_k * 4             # f32 accumulator scratch
                + 2 * tm_ * 2 * nh * 2        # bf16 output, double-buffered
                + (two_k // 2) * nh * 2       # resident weight
                + 2 * tm_ * 4)                # 1/deg column

    budget = int(vmem_limit * 0.8)
    while est(tm, tk) > budget and tk > 256:
        tk //= 2
    while est(tm, tk) > budget and tm > 256:
        tm //= 2
    return tm, tk


# ---------------------------------------------------------------------------
# Kernel 1: one GraphSAGE-mean (gcn-mode) layer, pos+corrupted fused.
#   Hs  = [H_pos | H_neg]                                        (N, 2*K)
#   agg = (A_bin @ Hs) * (1/deg)  per destination row            (mean agg)
#   out = [relu(agg_pos @ W) | relu(agg_neg @ W)]                (N, 2*n_h)
# Grid = (node tile i, source-node reduction tile k); k last; f32 accumulator.
# ---------------------------------------------------------------------------
def _sage_layer_kernel(a_ref, dinv_ref, hs_ref, w_ref, out_ref, acc_ref):
    k = pl.program_id(1)

    @pl.when(k == 0)
    def _():
        acc_ref[...] = jnp.zeros_like(acc_ref)

    # int8 binary adjacency -> bf16 (cheap VPU dequant), bf16 x bf16 on the MXU
    # with f32 accumulation.  A is the dominant HBM stream; int8 halves it.
    a_bf = a_ref[...].astype(jnp.bfloat16)
    acc_ref[...] += jnp.dot(a_bf, hs_ref[...],
                            preferred_element_type=jnp.float32)

    @pl.when(k == pl.num_programs(1) - 1)
    def _():
        k_in, nh = w_ref.shape
        w = w_ref[...]
        # f32 per-row 1/deg scale (mean aggregation) applied once, post-sum.
        agg = acc_ref[...] * dinv_ref[...]
        h_pos = jax.nn.relu(jnp.dot(agg[:, :k_in].astype(jnp.bfloat16), w,
                                    preferred_element_type=jnp.float32))
        h_neg = jax.nn.relu(jnp.dot(agg[:, k_in:].astype(jnp.bfloat16), w,
                                    preferred_element_type=jnp.float32))
        # Direct half writes (no concatenate temporary); both halves 128-aligned.
        out_ref[:, :nh] = h_pos.astype(out_ref.dtype)
        out_ref[:, nh:] = h_neg.astype(out_ref.dtype)


def _sage_layer(a_i8, dinv, hs_bf, w_bf, *, tm, tk, vmem_limit):
    n_p = a_i8.shape[0]
    two_k = hs_bf.shape[1]
    k_in, nh_out = w_bf.shape
    return pl.pallas_call(
        _sage_layer_kernel,
        out_shape=jax.ShapeDtypeStruct((n_p, 2 * nh_out), jnp.bfloat16),
        grid_spec=pltpu.PrefetchScalarGridSpec(
            num_scalar_prefetch=0,
            grid=(n_p // tm, n_p // tk),
            in_specs=[
                pl.BlockSpec((tm, tk), lambda i, k: (i, k)),        # A tile (int8)
                pl.BlockSpec((tm, 1), lambda i, k: (i, 0)),         # 1/deg column
                pl.BlockSpec((tk, two_k), lambda i, k: (k, 0)),     # stacked H tile
                pl.BlockSpec((k_in, nh_out), lambda i, k: (0, 0)),  # weight (resident)
            ],
            out_specs=pl.BlockSpec((tm, 2 * nh_out), lambda i, k: (i, 0)),
            scratch_shapes=[pltpu.VMEM((tm, two_k), jnp.float32)],
        ),
        compiler_params=pltpu.CompilerParams(
            dimension_semantics=("parallel", "arbitrary"),
            vmem_limit_bytes=vmem_limit,
        ),
    )(a_i8, dinv, hs_bf, w_bf)


# ---------------------------------------------------------------------------
# Kernel 2: AvgReadout + sigmoid + bilinear projection.
#   wc = sigmoid(mean_over_true_nodes(h_1)) @ W_b^T              (1, n_h)
# Only the positive half of hs3 is streamed (BlockSpec selects columns [:nh]).
# ---------------------------------------------------------------------------
def _readout_kernel(hs_ref, wbt_ref, wc_ref, acc_ref, *, inv_n):
    i = pl.program_id(0)

    @pl.when(i == 0)
    def _():
        acc_ref[...] = jnp.zeros_like(acc_ref)

    acc_ref[...] += jnp.sum(hs_ref[...].astype(jnp.float32),
                            axis=0, keepdims=True)

    @pl.when(i == pl.num_programs(0) - 1)
    def _():
        c = jax.nn.sigmoid(acc_ref[...] * inv_n)                 # (1, nh)
        wc_ref[...] = jnp.dot(c, wbt_ref[...],
                              preferred_element_type=jnp.float32)


def _readout(hs_bf, wbt, n_true, *, tm, vmem_limit):
    n_p = hs_bf.shape[0]
    nh = wbt.shape[0]
    kernel = functools.partial(_readout_kernel, inv_n=1.0 / float(n_true))
    return pl.pallas_call(
        kernel,
        out_shape=jax.ShapeDtypeStruct((1, nh), jnp.float32),
        grid_spec=pltpu.PrefetchScalarGridSpec(
            num_scalar_prefetch=0,
            grid=(n_p // tm,),
            in_specs=[
                pl.BlockSpec((tm, nh), lambda i: (i, 0)),   # positive half only
                pl.BlockSpec((nh, nh), lambda i: (0, 0)),
            ],
            out_specs=pl.BlockSpec((1, nh), lambda i: (0, 0)),
            scratch_shapes=[pltpu.VMEM((1, nh), jnp.float32)],
        ),
        compiler_params=pltpu.CompilerParams(
            dimension_semantics=("arbitrary",),
            vmem_limit_bytes=vmem_limit,
        ),
    )(hs_bf, wbt)


# ---------------------------------------------------------------------------
# Kernel 3: discriminator scores, lane-dense (2, N) output.
#   sc_1[n] = h_pos[n] . wc + b ;  sc_2[n] = h_neg[n] . wc + b
# bf16 x bf16 dots with f32 accumulation (no full-tile upcast).
# ---------------------------------------------------------------------------
def _score_kernel(wc_ref, b_ref, hs_ref, out_ref):
    nh = wc_ref.shape[1]
    wc_bf = wc_ref[...].astype(jnp.bfloat16)      # (1, nh), cast once
    h = hs_ref[...]                               # (tm, 2*nh) bf16
    dn = (((1,), (1,)), ((), ()))
    b = b_ref[0, 0]                               # scalar from SMEM
    sc1 = jax.lax.dot_general(wc_bf, h[:, :nh], dn,
                              preferred_element_type=jnp.float32)   # (1, tm)
    sc2 = jax.lax.dot_general(wc_bf, h[:, nh:], dn,
                              preferred_element_type=jnp.float32)   # (1, tm)
    out_ref[0:1, :] = sc1 + b
    out_ref[1:2, :] = sc2 + b


def _scores(wc, bb, hs_bf, *, tm, vmem_limit):
    n_p, width = hs_bf.shape
    nh = wc.shape[1]
    return pl.pallas_call(
        _score_kernel,
        out_shape=jax.ShapeDtypeStruct((2, n_p), jnp.float32),
        grid_spec=pltpu.PrefetchScalarGridSpec(
            num_scalar_prefetch=0,
            grid=(n_p // tm,),
            in_specs=[
                pl.BlockSpec((1, nh), lambda i: (0, 0)),
                pl.BlockSpec(memory_space=pltpu.MemorySpace.SMEM),   # bias scalar
                pl.BlockSpec((tm, width), lambda i: (i, 0)),
            ],
            out_specs=pl.BlockSpec((2, tm), lambda i: (0, i)),
        ),
        compiler_params=pltpu.CompilerParams(
            dimension_semantics=("parallel",),
            vmem_limit_bytes=vmem_limit,
        ),
    )(wc, bb, hs_bf)


# ---------------------------------------------------------------------------
# Wrapper: pad, quantize adjacency, run 3 fused layers + readout + scores.
# ---------------------------------------------------------------------------
def dgi_ind_ml_forward(x, x_corrupt, adj, params):
    """DGI_ind_ml.forward (gcn=True, skip_connection=False, msk=None,
    samp_bias=None).  `adj` is the binary adjacency *including self-loops*.
    Returns logits of shape (1, 2N)."""
    n, f = x.shape
    n_h = params["w1t"].shape[1]

    f_p = _round_up(f, LANE)
    nh_p = _round_up(n_h, LANE)
    n_p = _round_up(n, NODE_ALIGN)

    vmem_limit = _vmem_limit_bytes()
    tm1, tk1 = _pick_node_tiles(n_p, 2 * f_p, nh_p, vmem_limit)   # layer 1 (wide Hs)
    tm2, tk2 = _pick_node_tiles(n_p, 2 * nh_p, nh_p, vmem_limit)  # layers 2-3

    # Binary adjacency as int8 (half the dominant HBM stream); padded rows have
    # zero degree -> dinv = 0 -> exactly zero embeddings, so the readout mean
    # (divided by the true n) is unaffected.
    a_pad = _pad2(adj, n_p, n_p)
    a_i8 = a_pad.astype(jnp.int8)
    deg = jnp.sum(a_pad, axis=1, keepdims=True)
    dinv = jnp.where(deg > 0.0, 1.0 / jnp.maximum(deg, 1.0), 0.0).astype(jnp.float32)

    x_p = _pad2(x, n_p, f_p)
    xc_p = _pad2(x_corrupt, n_p, f_p)
    hs0 = jnp.concatenate([x_p, xc_p], axis=1).astype(jnp.bfloat16)   # (n_p, 2*f_p)

    w1 = _pad2(params["w1t"], f_p, nh_p).astype(jnp.bfloat16)
    w2 = _pad2(params["w2t"], nh_p, nh_p).astype(jnp.bfloat16)
    w3 = _pad2(params["w3t"], nh_p, nh_p).astype(jnp.bfloat16)
    wbt = _pad2(params["wbt"], nh_p, nh_p)                            # f32
    bb = params["bb"].astype(jnp.float32)                             # (1, 1)

    # 3-layer encoder; positive + corrupted passes fused in one A@H stream.
    hs1 = _sage_layer(a_i8, dinv, hs0, w1, tm=tm1, tk=tk1, vmem_limit=vmem_limit)
    hs2 = _sage_layer(a_i8, dinv, hs1, w2, tm=tm2, tk=tk2, vmem_limit=vmem_limit)
    hs3 = _sage_layer(a_i8, dinv, hs2, w3, tm=tm2, tk=tk2, vmem_limit=vmem_limit)

    # AvgReadout + sigmoid + bilinear projection (wc = sigmoid(mean(h1)) @ Wb^T).
    wc = _readout(hs3, wbt, n, tm=tm2, vmem_limit=vmem_limit)

    # Discriminator: lane-dense (2, n_p); row 0 = sc_1, row 1 = sc_2.
    sc = _scores(wc, bb, hs3, tm=tm2, vmem_limit=vmem_limit)

    # torch.cat((sc_1, sc_2), dim=1)
    return sc[:, :n].reshape(1, 2 * n)


# ---------------------------------------------------------------------------
# Deterministic test inputs.
# ---------------------------------------------------------------------------
def make_params(key, ft_size, n_h):
    k1, k2, k3, k4 = jax.random.split(key, 4)

    def xavier(k, shape):
        fan_in = shape[0]
        return jax.random.normal(k, shape, jnp.float32) / jnp.sqrt(jnp.float32(fan_in))

    return {
        # Encoder weights, stored transposed: (in_dim, n_h).
        "w1t": xavier(k1, (ft_size, n_h)),
        "w2t": xavier(k2, (n_h, n_h)),
        "w3t": xavier(k3, (n_h, n_h)),
        # nn.Bilinear(n_h, n_h, 1) weight W[0], stored transposed + scalar bias.
        "wbt": xavier(k4, (n_h, n_h)),
        "bb": jnp.full((1, 1), 0.01, jnp.float32),
    }


def make_graph(key, n_nodes, ft_size):
    kx, kp = jax.random.split(key)
    x = jax.random.normal(kx, (n_nodes, ft_size), jnp.float32)
    # corruption: row-shuffled features (standard DGI negative samples)
    perm = jax.random.permutation(kp, n_nodes)
    x_corrupt = x[perm]
    # deterministic ring graph + self loops (binary adjacency)
    idx = jnp.arange(n_nodes)
    adj = (jnp.zeros((n_nodes, n_nodes), jnp.float32)
           .at[idx, idx].set(1.0)
           .at[idx, (idx + 1) % n_nodes].set(1.0)
           .at[idx, (idx - 1) % n_nodes].set(1.0))
    return x, x_corrupt, adj


if __name__ == "__main__":
    # TODO(synk): for production (many small graphs) batch graphs along a
    #   leading grid axis instead of issuing one tiny call per graph.
    N, FT, NH = 16, 32, 32   # nodes, ft_size, n_h
    key = jax.random.PRNGKey(0)
    kg, kp = jax.random.split(key)
    x, x_corrupt, adj = make_graph(kg, N, FT)
    params = make_params(kp, FT, NH)

    logits = jax.jit(dgi_ind_ml_forward)(x, x_corrupt, adj, params)
    logits = jax.block_until_ready(logits)

    assert logits.shape == (1, 2 * N), logits.shape
    assert bool(jnp.all(jnp.isfinite(logits)))
    print("KERNEL_OK")
</pallas_src>

<mosaic_0001>
module attributes {stable_mosaic.version = 11 : i64} {
  func.func @_score_kernel(%arg0: i32, %arg1: memref<1x128xf32, #tpu.memory_space<vmem>>, %arg2: memref<1x1xf32, #tpu.memory_space<smem>>, %arg3: memref<256x256xbf16, #tpu.memory_space<vmem>>, %arg4: memref<2x256xf32, #tpu.memory_space<vmem>>) attributes {dimension_semantics = [#tpu.dimension_semantics<parallel>], iteration_bounds = array<i64: 1>, scalar_prefetch = 0 : i64, scratch_operands = 0 : i64, tpu.core_type = #tpu.core_type<tc>, window_params = [{pipeline_mode = #tpu.pipeline_mode<synchronous>, transform_indices = @transform_0, window_bounds = array<i64: 1, 128>}, {transform_indices = @transform_1, window_bounds = array<i64: 1, 1>}, {transform_indices = @transform_2, window_bounds = array<i64: 256, 256>}, {transform_indices = @transform_3, window_bounds = array<i64: 2, 256>}]} {
    %c0 = arith.constant 0 : index
    %c0_0 = arith.constant 0 : index
    %0 = vector.load %arg1[%c0, %c0_0] : memref<1x128xf32, #tpu.memory_space<vmem>>, vector<1x128xf32>
    %1 = arith.truncf %0 : vector<1x128xf32> to vector<1x128xbf16>
    %c0_1 = arith.constant 0 : index
    %c0_2 = arith.constant 0 : index
    %2 = vector.load %arg3[%c0_1, %c0_2] : memref<256x256xbf16, #tpu.memory_space<vmem>>, vector<256x256xbf16>
    %c0_3 = arith.constant 0 : index
    %c0_4 = arith.constant 0 : index
    %3 = memref.load %arg2[%c0_3, %c0_4] : memref<1x1xf32, #tpu.memory_space<smem>>
    %4 = vector.extract_strided_slice %2 {offsets = [0, 0], sizes = [256, 128], strides = [1, 1]} : vector<256x256xbf16> to vector<256x128xbf16>
    %cst = arith.constant dense<0.000000e+00> : vector<1x256xf32>
    %5 = tpu.matmul %1, %4, %cst {dimension_numbers = #tpu.dot_dimension_numbers<[1], [1], [0], [0], [0, 0, 1, 0], [], []>} : vector<1x128xbf16>, vector<256x128xbf16>, vector<1x256xf32> -> vector<1x256xf32>
    %6 = vector.extract_strided_slice %2 {offsets = [0, 128], sizes = [256, 128], strides = [1, 1]} : vector<256x256xbf16> to vector<256x128xbf16>
    %cst_5 = arith.constant dense<0.000000e+00> : vector<1x256xf32>
    %7 = tpu.matmul %1, %6, %cst_5 {dimension_numbers = #tpu.dot_dimension_numbers<[1], [1], [0], [0], [0, 0, 1, 0], [], []>} : vector<1x128xbf16>, vector<256x128xbf16>, vector<1x256xf32> -> vector<1x256xf32>
    %8 = vector.broadcast %3 : f32 to vector<1x256xf32>
    %9 = arith.addf %5, %8 : vector<1x256xf32>
    %c0_6 = arith.constant 0 : index
    %c0_7 = arith.constant 0 : index
    %10 = vector.load %arg4[%c0_6, %c0_7] : memref<2x256xf32, #tpu.memory_space<vmem>>, vector<1x256xf32>
    tpu.vector_store %arg4[%c0_6, %c0_7], %9 {strides = array<i32>} : memref<2x256xf32, #tpu.memory_space<vmem>>, vector<1x256xf32>,
    %11 = vector.broadcast %3 : f32 to vector<1x256xf32>
    %12 = arith.addf %7, %11 : vector<1x256xf32>
    %c1 = arith.constant 1 : index
    %c0_8 = arith.constant 0 : index
    %13 = vector.load %arg4[%c1, %c0_8] : memref<2x256xf32, #tpu.memory_space<vmem>>, vector<1x256xf32>
    tpu.vector_store %arg4[%c1, %c0_8], %12 {strides = array<i32>} : memref<2x256xf32, #tpu.memory_space<vmem>>, vector<1x256xf32>,
    return
  }
  func.func @transform_0(%arg0: i32) -> (i32, i32) {
    %c0_i32 = arith.constant 0 : i32
    %c0_i32_0 = arith.constant 0 : i32
    %c0_i32_1 = arith.constant 0 : i32
    return %c0_i32, %c0_i32_0 : i32, i32
  }
  func.func @transform_1(%arg0: i32) -> (i32, i32) {
    %c0_i32 = arith.constant 0 : i32
    %c0_i32_0 = arith.constant 0 : i32
    %c0_i32_1 = arith.constant 0 : i32
    return %c0_i32, %c0_i32_0 : i32, i32
  }
  func.func @transform_2(%arg0: i32) -> (i32, i32) {
    %c0_i32 = arith.constant 0 : i32
    %c0_i32_0 = arith.constant 0 : i32
    return %arg0, %c0_i32 : i32, i32
  }
  func.func @transform_3(%arg0: i32) -> (i32, i32) {
    %c0_i32 = arith.constant 0 : i32
    %c0_i32_0 = arith.constant 0 : i32
    return %c0_i32, %arg0 : i32, i32
  }
}

module attributes {stable_mosaic.version = 11 : i64} {
  func.func @_readout_kernel(%arg0: i32, %arg1: memref<256x128xbf16, #tpu.memory_space<vmem>>, %arg2: memref<128x128xf32, #tpu.memory_space<vmem>>, %arg3: memref<1x128xf32, #tpu.memory_space<vmem>>, %arg4: memref<1x128xf32, #tpu.memory_space<vmem>>) attributes {dimension_semantics = [#tpu.dimension_semantics<arbitrary>], iteration_bounds = array<i64: 1>, scalar_prefetch = 0 : i64, scratch_operands = 1 : i64, tpu.core_type = #tpu.core_type<tc>, window_params = [{transform_indices = @transform_0, window_bounds = array<i64: 256, 128>}, {pipeline_mode = #tpu.pipeline_mode<synchronous>, transform_indices = @transform_1, window_bounds = array<i64: 128, 128>}, {pipeline_mode = #tpu.pipeline_mode<synchronous>, transform_indices = @transform_2, window_bounds = array<i64: 1, 128>}]} {
    %c0_i32 = arith.constant 0 : i32
    %0 = arith.cmpi eq, %arg0, %c0_i32 : i32
    %1 = arith.extui %0 : i1 to i32
    %c0_i32_0 = arith.constant 0 : i32
    %2 = arith.cmpi ne, %1, %c0_i32_0 : i32
    scf.if %2 {
      %cst_8 = arith.constant 0.000000e+00 : f32
      %13 = vector.broadcast %cst_8 : f32 to vector<1x128xf32>
      %c0_9 = arith.constant 0 : index
      %c0_10 = arith.constant 0 : index
      %14 = vector.load %arg4[%c0_9, %c0_10] : memref<1x128xf32, #tpu.memory_space<vmem>>, vector<1x128xf32>
      tpu.vector_store %arg4[%c0_9, %c0_10], %13 {strides = array<i32>} : memref<1x128xf32, #tpu.memory_space<vmem>>, vector<1x128xf32>,
    } else {
    }
    %c0 = arith.constant 0 : index
    %c0_1 = arith.constant 0 : index
    %3 = vector.load %arg4[%c0, %c0_1] : memref<1x128xf32, #tpu.memory_space<vmem>>, vector<1x128xf32>
    %c0_2 = arith.constant 0 : index
    %c0_3 = arith.constant 0 : index
    %4 = vector.load %arg1[%c0_2, %c0_3] : memref<256x128xbf16, #tpu.memory_space<vmem>>, vector<256x128xbf16>
    %5 = arith.extf %4 : vector<256x128xbf16> to vector<256x128xf32>
    %cst = arith.constant dense<0.000000e+00> : vector<128xf32>
    %6 = vector.multi_reduction <add>, %5, %cst [0] : vector<256x128xf32> to vector<128xf32>
    %7 = vector.shape_cast %6 : vector<128xf32> to vector<1x128xf32>
    %8 = arith.addf %3, %7 : vector<1x128xf32>
    %c0_4 = arith.constant 0 : index
    %c0_5 = arith.constant 0 : index
    %9 = vector.load %arg4[%c0_4, %c0_5] : memref<1x128xf32, #tpu.memory_space<vmem>>, vector<1x128xf32>
    tpu.vector_store %arg4[%c0_4, %c0_5], %8 {strides = array<i32>} : memref<1x128xf32, #tpu.memory_space<vmem>>, vector<1x128xf32>,
    %c0_i32_6 = arith.constant 0 : i32
    %10 = arith.cmpi eq, %arg0, %c0_i32_6 : i32
    %11 = arith.extui %10 : i1 to i32
    %c0_i32_7 = arith.constant 0 : i32
    %12 = arith.cmpi ne, %11, %c0_i32_7 : i32
    scf.if %12 {
      %c0_8 = arith.constant 0 : index
      %c0_9 = arith.constant 0 : index
      %13 = vector.load %arg4[%c0_8, %c0_9] : memref<1x128xf32, #tpu.memory_space<vmem>>, vector<1x128xf32>
      %cst_10 = arith.constant 6.250000e-02 : f32
      %14 = vector.broadcast %cst_10 : f32 to vector<1x128xf32>
      %15 = arith.mulf %13, %14 : vector<1x128xf32>
      %16 = arith.negf %15 : vector<1x128xf32>
      %17 = math.exp %16 : vector<1x128xf32>
      %cst_11 = arith.constant 1.000000e+00 : f32
      %18 = vector.broadcast %cst_11 : f32 to vector<1x128xf32>
      %19 = arith.addf %18, %17 : vector<1x128xf32>
      %20 = arith.divf %18, %19 : vector<1x128xf32>
      %c0_12 = arith.constant 0 : index
      %c0_13 = arith.constant 0 : index
      %21 = vector.load %arg2[%c0_12, %c0_13] : memref<128x128xf32, #tpu.memory_space<vmem>>, vector<128x128xf32>
      %cst_14 = arith.constant dense<0.000000e+00> : vector<1x128xf32>
      %22 = tpu.matmul %20, %21, %cst_14 {dimension_numbers = #tpu.dot_dimension_numbers<[1], [0], [0], [1], [0, 0, 1, 1], [], []>} : vector<1x128xf32>, vector<128x128xf32>, vector<1x128xf32> -> vector<1x128xf32>
      %c0_15 = arith.constant 0 : index
      %c0_16 = arith.constant 0 : index
      %23 = vector.load %arg3[%c0_15, %c0_16] : memref<1x128xf32, #tpu.memory_space<vmem>>, vector<1x128xf32>
      tpu.vector_store %arg3[%c0_15, %c0_16], %22 {strides = array<i32>} : memref<1x128xf32, #tpu.memory_space<vmem>>, vector<1x128xf32>,
    } else {
    }
    return
  }
  func.func @transform_0(%arg0: i32) -> (i32, i32) {
    %c0_i32 = arith.constant 0 : i32
    %c0_i32_0 = arith.constant 0 : i32
    return %arg0, %c0_i32 : i32, i32
  }
  func.func @transform_1(%arg0: i32) -> (i32, i32) {
    %c0_i32 = arith.constant 0 : i32
    %c0_i32_0 = arith.constant 0 : i32
    %c0_i32_1 = arith.constant 0 : i32
    return %c0_i32, %c0_i32_0 : i32, i32
  }
  func.func @transform_2(%arg0: i32) -> (i32, i32) {
    %c0_i32 = arith.constant 0 : i32
    %c0_i32_0 = arith.constant 0 : i32
    %c0_i32_1 = arith.constant 0 : i32
    return %c0_i32, %c0_i32_0 : i32, i32
  }
}

module attributes {stable_mosaic.version = 11 : i64} {
  func.func @_sage_layer_kernel(%arg0: i32, %arg1: i32, %arg2: memref<256x256xi8, #tpu.memory_space<vmem>>, %arg3: memref<256x1xf32, #tpu.memory_space<vmem>>, %arg4: memref<256x256xbf16, #tpu.memory_space<vmem>>, %arg5: memref<128x128xbf16, #tpu.memory_space<vmem>>, %arg6: memref<256x256xbf16, #tpu.memory_space<vmem>>, %arg7: memref<256x256xf32, #tpu.memory_space<vmem>>) attributes {dimension_semantics = [#tpu.dimension_semantics<parallel>, #tpu.dimension_semantics<arbitrary>], iteration_bounds = array<i64: 1, 1>, scalar_prefetch = 0 : i64, scratch_operands = 1 : i64, tpu.core_type = #tpu.core_type<tc>, window_params = [{transform_indices = @transform_0, window_bounds = array<i64: 256, 256>}, {transform_indices = @transform_1, window_bounds = array<i64: 256, 1>}, {transform_indices = @transform_2, window_bounds = array<i64: 256, 256>}, {pipeline_mode = #tpu.pipeline_mode<synchronous>, transform_indices = @transform_3, window_bounds = array<i64: 128, 128>}, {transform_indices = @transform_4, window_bounds = array<i64: 256, 256>}]} {
    %c0_i32 = arith.constant 0 : i32
    %0 = arith.cmpi eq, %arg1, %c0_i32 : i32
    %1 = arith.extui %0 : i1 to i32
    %c0_i32_0 = arith.constant 0 : i32
    %2 = arith.cmpi ne, %1, %c0_i32_0 : i32
    scf.if %2 {
      %cst_10 = arith.constant 0.000000e+00 : f32
      %13 = vector.broadcast %cst_10 : f32 to vector<256x256xf32>
      %c0_11 = arith.constant 0 : index
      %c0_12 = arith.constant 0 : index
      %14 = vector.load %arg7[%c0_11, %c0_12] : memref<256x256xf32, #tpu.memory_space<vmem>>, vector<256x256xf32>
      tpu.vector_store %arg7[%c0_11, %c0_12], %13 {strides = array<i32>} : memref<256x256xf32, #tpu.memory_space<vmem>>, vector<256x256xf32>,
    } else {
    }
    %c0 = arith.constant 0 : index
    %c0_1 = arith.constant 0 : index
    %3 = vector.load %arg2[%c0, %c0_1] : memref<256x256xi8, #tpu.memory_space<vmem>>, vector<256x256xi8>
    %4 = arith.sitofp %3 : vector<256x256xi8> to vector<256x256xbf16>
    %c0_2 = arith.constant 0 : index
    %c0_3 = arith.constant 0 : index
    %5 = vector.load %arg7[%c0_2, %c0_3] : memref<256x256xf32, #tpu.memory_space<vmem>>, vector<256x256xf32>
    %c0_4 = arith.constant 0 : index
    %c0_5 = arith.constant 0 : index
    %6 = vector.load %arg4[%c0_4, %c0_5] : memref<256x256xbf16, #tpu.memory_space<vmem>>, vector<256x256xbf16>
    %cst = arith.constant dense<0.000000e+00> : vector<256x256xf32>
    %7 = tpu.matmul %4, %6, %cst {dimension_numbers = #tpu.dot_dimension_numbers<[1], [0], [0], [1], [0, 0, 1, 1], [], []>} : vector<256x256xbf16>, vector<256x256xbf16>, vector<256x256xf32> -> vector<256x256xf32>
    %8 = arith.addf %5, %7 : vector<256x256xf32>
    %c0_6 = arith.constant 0 : index
    %c0_7 = arith.constant 0 : index
    %9 = vector.load %arg7[%c0_6, %c0_7] : memref<256x256xf32, #tpu.memory_space<vmem>>, vector<256x256xf32>
    tpu.vector_store %arg7[%c0_6, %c0_7], %8 {strides = array<i32>} : memref<256x256xf32, #tpu.memory_space<vmem>>, vector<256x256xf32>,
    %c0_i32_8 = arith.constant 0 : i32
    %10 = arith.cmpi eq, %arg1, %c0_i32_8 : i32
    %11 = arith.extui %10 : i1 to i32
    %c0_i32_9 = arith.constant 0 : i32
    %12 = arith.cmpi ne, %11, %c0_i32_9 : i32
    scf.if %12 {
      %c0_10 = arith.constant 0 : index
      %c0_11 = arith.constant 0 : index
      %13 = vector.load %arg5[%c0_10, %c0_11] : memref<128x128xbf16, #tpu.memory_space<vmem>>, vector<128x128xbf16>
      %c0_12 = arith.constant 0 : index
      %c0_13 = arith.constant 0 : index
      %14 = vector.load %arg7[%c0_12, %c0_13] : memref<256x256xf32, #tpu.memory_space<vmem>>, vector<256x256xf32>
      %c0_14 = arith.constant 0 : index
      %c0_15 = arith.constant 0 : index
      %15 = vector.load %arg3[%c0_14, %c0_15] : memref<256x1xf32, #tpu.memory_space<vmem>>, vector<256x1xf32>
      %16 = vector.broadcast %15 : vector<256x1xf32> to vector<256x256xf32>
      %17 = arith.mulf %14, %16 : vector<256x256xf32>
      %18 = vector.extract_strided_slice %17 {offsets = [0, 0], sizes = [256, 128], strides = [1, 1]} : vector<256x256xf32> to vector<256x128xf32>
      %19 = arith.truncf %18 : vector<256x128xf32> to vector<256x128xbf16>
      %cst_16 = arith.constant dense<0.000000e+00> : vector<256x128xf32>
      %20 = tpu.matmul %19, %13, %cst_16 {dimension_numbers = #tpu.dot_dimension_numbers<[1], [0], [0], [1], [0, 0, 1, 1], [], []>} : vector<256x128xbf16>, vector<128x128xbf16>, vector<256x128xf32> -> vector<256x128xf32>
      %cst_17 = arith.constant 0.000000e+00 : f32
      %21 = vector.broadcast %cst_17 : f32 to vector<256x128xf32>
      %22 = arith.maximumf %20, %21 : vector<256x128xf32>
      %23 = vector.extract_strided_slice %17 {offsets = [0, 128], sizes = [256, 128], strides = [1, 1]} : vector<256x256xf32> to vector<256x128xf32>
      %24 = arith.truncf %23 : vector<256x128xf32> to vector<256x128xbf16>
      %cst_18 = arith.constant dense<0.000000e+00> : vector<256x128xf32>
      %25 = tpu.matmul %24, %13, %cst_18 {dimension_numbers = #tpu.dot_dimension_numbers<[1], [0], [0], [1], [0, 0, 1, 1], [], []>} : vector<256x128xbf16>, vector<128x128xbf16>, vector<256x128xf32> -> vector<256x128xf32>
      %cst_19 = arith.constant 0.000000e+00 : f32
      %26 = vector.broadcast %cst_19 : f32 to vector<256x128xf32>
      %27 = arith.maximumf %25, %26 : vector<256x128xf32>
      %28 = arith.truncf %22 : vector<256x128xf32> to vector<256x128xbf16>
      %c0_20 = arith.constant 0 : index
      %c0_21 = arith.constant 0 : index
      %29 = vector.load %arg6[%c0_20, %c0_21] : memref<256x256xbf16, #tpu.memory_space<vmem>>, vector<256x128xbf16>
      tpu.vector_store %arg6[%c0_20, %c0_21], %28 {strides = array<i32>} : memref<256x256xbf16, #tpu.memory_space<vmem>>, vector<256x128xbf16>,
      %30 = arith.truncf %27 : vector<256x128xf32> to vector<256x128xbf16>
      %c0_22 = arith.constant 0 : index
      %c128 = arith.constant 128 : index
      %31 = vector.load %arg6[%c0_22, %c128] : memref<256x256xbf16, #tpu.memory_space<vmem>>, vector<256x128xbf16>
      tpu.vector_store %arg6[%c0_22, %c128], %30 {strides = array<i32>} : memref<256x256xbf16, #tpu.memory_space<vmem>>, vector<256x128xbf16>,
    } else {
    }
    return
  }
  func.func @transform_0(%arg0: i32, %arg1: i32) -> (i32, i32) {
    %c0_i32 = arith.constant 0 : i32
    return %arg0, %arg1 : i32, i32
  }
  func.func @transform_1(%arg0: i32, %arg1: i32) -> (i32, i32) {
    %c0_i32 = arith.constant 0 : i32
    %c0_i32_0 = arith.constant 0 : i32
    return %arg0, %c0_i32 : i32, i32
  }
  func.func @transform_2(%arg0: i32, %arg1: i32) -> (i32, i32) {
    %c0_i32 = arith.constant 0 : i32
    %c0_i32_0 = arith.constant 0 : i32
    return %arg1, %c0_i32 : i32, i32
  }
  func.func @transform_3(%arg0: i32, %arg1: i32) -> (i32, i32) {
    %c0_i32 = arith.constant 0 : i32
    %c0_i32_0 = arith.constant 0 : i32
    %c0_i32_1 = arith.constant 0 : i32
    return %c0_i32, %c0_i32_0 : i32, i32
  }
  func.func @transform_4(%arg0: i32, %arg1: i32) -> (i32, i32) {
    %c0_i32 = arith.constant 0 : i32
    %c0_i32_0 = arith.constant 0 : i32
    return %arg0, %c0_i32 : i32, i32
  }
}

</mosaic_0001>

<bundles_post_ra>
// kernel: dgi_ind_ml_forward.9
= control target key start
LH: loop header
LB: loop body
LE: loop exit
PB: predicated region body
PF: predicated region fallthrough
CT: control target
= control target key end

     0   :  { %vm176_vm0 = vcmask 1040384   ;;  %s670_s2 = inlined_call_operand.vmem [shape: bf16[256,256], index: 2, kind: input, shape index: {}]   ;;  %s671_s0 = inlined_call_operand.vmem [shape: f32[1,128], index: 0, kind: input, shape index: {}]   ;;  %s672_s1 = inlined_call_operand.<no memory space> [shape: f32[1,1], index: 1, kind: input, shape index: {}]   ;;  %s673_s3 = inlined_call_operand.vmem [shape: f32[2,256], index: 3, kind: output, shape index: {}]  }
   0x1   :  { %v315_v0 = vld [vmem:[%s670_s2 + $0x70] sm:$0xf]  ;;  %v429_v1 = vld [vmem:[%s670_s2 + $0x74] sm:$0xf0]  ;;  %v428_v5 = vld [vmem:[%s670_s2 + $0x74] sm:$0xf] }
   0x2   :  { %v347_v2 = vld [vmem:[%s670_s2 + $0xf0] sm:$0xf]  ;;  %v316_v3 = vor.u32 %v429_v1, %v315_v0  ;;  %v445_v4 = vld [vmem:[%s670_s2 + $0xf4] sm:$0xf0]  ;;  %v377_v6 = vld [vmem:[%s670_s2 + $0x78] sm:$0xf0] }
   0x3   :  { %v348_v7 = vor.u32 %v445_v4, %v347_v2  ;;  %v380_v8 = vor.u32 %v428_v5, %v377_v6  ;;  %v444_v9 = vld [vmem:[%s670_s2 + $0xf4] sm:$0xf]  ;;  %v409_v10 = vld [vmem:[%s670_s2 + $0xf8] sm:$0xf0]  ;;  %v311_v12 = vld [vmem:[%s670_s2 + $0x60] sm:$0xf] }
   0x4   :  { %147 = vmatpush.bf16.xpose.msra.mxu0 %v316_v3  ;;  %v412_v11 = vor.u32 %v444_v9, %v409_v10  ;;  %v427_v13 = vld [vmem:[%s670_s2 + $0x64] sm:$0xf0]  ;;  %v343_v14 = vld [vmem:[%s670_s2 + $0xe0] sm:$0xf]  ;;  %v426_v16 = vld [vmem:[%s670_s2 + $0x64] sm:$0xf] }
   0x5   :  { %160 = vmatpush.bf16.xpose.msra.mxu1 %v348_v7  ;;  %248 = vmatpush.bf16.xpose.msra.mxu2 %v380_v8  ;;  %v443_v15 = vld [vmem:[%s670_s2 + $0xe4] sm:$0xf0]  ;;  %v373_v17 = vld [vmem:[%s670_s2 + $0x68] sm:$0xf0]  ;;  %v442_v18 = vld [vmem:[%s670_s2 + $0xe4] sm:$0xf]  ;;  %v312_v20 = vor.u32 %v427_v13, %v311_v12 }
   0x6   :  { %261 = vmatpush.bf16.xpose.msra.mxu3 %v412_v11  ;;  %v405_v19 = vld [vmem:[%s670_s2 + $0xe8] sm:$0xf0]  ;;  %v344_v21 = vor.u32 %v443_v15, %v343_v14  ;;  %v376_v22 = vor.u32 %v426_v16, %v373_v17  ;;  %v307_v24 = vld [vmem:[%s670_s2 + $0x50] sm:$0xf]  ;;  %v425_v25 = vld [vmem:[%s670_s2 + $0x54] sm:$0xf0] }
   0x7   :  { %v408_v23 = vor.u32 %v442_v18, %v405_v19  ;;  %v339_v26 = vld [vmem:[%s670_s2 + $0xd0] sm:$0xf]  ;;  %v441_v27 = vld [vmem:[%s670_s2 + $0xd4] sm:$0xf0]  ;;  %v424_v28 = vld [vmem:[%s670_s2 + $0x54] sm:$0xf]  ;;  %v308_v32 = vor.u32 %v425_v25, %v307_v24 }
   0x8   :  { %v369_v29 = vld [vmem:[%s670_s2 + $0x58] sm:$0xf0]  ;;  %v440_v30 = vld [vmem:[%s670_s2 + $0xd4] sm:$0xf]  ;;  %v340_v33 = vor.u32 %v441_v27, %v339_v26  ;;  %v303_v36 = vld [vmem:[%s670_s2 + $0x40] sm:$0xf] }
   0x9   :  { %v401_v31 = vld [vmem:[%s670_s2 + $0xd8] sm:$0xf0]  ;;  %v372_v34 = vor.u32 %v424_v28, %v369_v29  ;;  %v423_v37 = vld [vmem:[%s670_s2 + $0x44] sm:$0xf0]  ;;  %v335_v38 = vld [vmem:[%s670_s2 + $0xc0] sm:$0xf] }
   0xa   :  { %v404_v35 = vor.u32 %v440_v30, %v401_v31  ;;  %v439_v39 = vld [vmem:[%s670_s2 + $0xc4] sm:$0xf0]  ;;  %v422_v40 = vld [vmem:[%s670_s2 + $0x44] sm:$0xf]  ;;  %v365_v41 = vld [vmem:[%s670_s2 + $0x48] sm:$0xf0]  ;;  %v304_v44 = vor.u32 %v423_v37, %v303_v36  ;;  %v179_v36 = vlaneseq }
   0xb   :  { %v438_v42 = vld [vmem:[%s670_s2 + $0xc4] sm:$0xf]  ;;  %v397_v43 = vld [vmem:[%s670_s2 + $0xc8] sm:$0xf0]  ;;  %v336_v45 = vor.u32 %v439_v39, %v335_v38  ;;  %v368_v46 = vor.u32 %v422_v40, %v365_v41  ;;  %v299_v48 = vld [vmem:[%s670_s2 + $0x30] sm:$0xf] }
   0xc   :  { %148 = vmatpush.bf16.xpose.msra.mxu0 %v312_v20  ;;  %v400_v47 = vor.u32 %v438_v42, %v397_v43  ;;  %v421_v49 = vld [vmem:[%s670_s2 + $0x34] sm:$0xf0]  ;;  %v331_v50 = vld [vmem:[%s670_s2 + $0xb0] sm:$0xf]  ;;  %v420_v52 = vld [vmem:[%s670_s2 + $0x34] sm:$0xf] }
   0xd   :  { %161 = vmatpush.bf16.xpose.msra.mxu1 %v344_v21  ;;  %249 = vmatpush.bf16.xpose.msra.mxu2 %v376_v22  ;;  %v437_v51 = vld [vmem:[%s670_s2 + $0xb4] sm:$0xf0]  ;;  %v361_v53 = vld [vmem:[%s670_s2 + $0x38] sm:$0xf0]  ;;  %v436_v54 = vld [vmem:[%s670_s2 + $0xb4] sm:$0xf]  ;;  %v300_v56 = vor.u32 %v421_v49, %v299_v48 }
   0xe   :  { %262 = vmatpush.bf16.xpose.msra.mxu3 %v408_v23  ;;  %v393_v55 = vld [vmem:[%s670_s2 + $0xb8] sm:$0xf0]  ;;  %v332_v57 = vor.u32 %v437_v51, %v331_v50  ;;  %v364_v58 = vor.u32 %v420_v52, %v361_v53  ;;  %v295_v60 = vld [vmem:[%s670_s2 + $0x20] sm:$0xf]  ;;  %v419_v61 = vld [vmem:[%s670_s2 + $0x24] sm:$0xf0] }
   0xf   :  { %v396_v59 = vor.u32 %v436_v54, %v393_v55  ;;  %v327_v62 = vld [vmem:[%s670_s2 + $0xa0] sm:$0xf]  ;;  %v435_v63 = vld [vmem:[%s670_s2 + $0xa4] sm:$0xf0]  ;;  %v418_v0 = vld [vmem:[%s670_s2 + $0x24] sm:$0xf]  ;;  %v296_v4 = vor.u32 %v419_v61, %v295_v60 }
  0x10   :  { %v357_v1 = vld [vmem:[%s670_s2 + $0x28] sm:$0xf0]  ;;  %v434_v2 = vld [vmem:[%s670_s2 + $0xa4] sm:$0xf]  ;;  %v328_v5 = vor.u32 %v435_v63, %v327_v62  ;;  %v291_v8 = vld [vmem:[%s670_s2 + $0x10] sm:$0xf] }
  0x11   :  { %v389_v3 = vld [vmem:[%s670_s2 + $0xa8] sm:$0xf0]  ;;  %v360_v6 = vor.u32 %v418_v0, %v357_v1  ;;  %v417_v9 = vld [vmem:[%s670_s2 + $0x14] sm:$0xf0]  ;;  %v323_v10 = vld [vmem:[%s670_s2 + $0x90] sm:$0xf] }
  0x12   :  { %v392_v7 = vor.u32 %v434_v2, %v389_v3  ;;  %v433_v11 = vld [vmem:[%s670_s2 + $0x94] sm:$0xf0]  ;;  %v416_v12 = vld [vmem:[%s670_s2 + $0x14] sm:$0xf]  ;;  %v353_v13 = vld [vmem:[%s670_s2 + $0x18] sm:$0xf0]  ;;  %v292_v16 = vor.u32 %v417_v9, %v291_v8 }
  0x13   :  { %v432_v14 = vld [vmem:[%s670_s2 + $0x94] sm:$0xf]  ;;  %v385_v15 = vld [vmem:[%s670_s2 + $0x98] sm:$0xf0]  ;;  %v324_v17 = vor.u32 %v433_v11, %v323_v10  ;;  %v356_v18 = vor.u32 %v416_v12, %v353_v13  ;;  %v287_v20 = vld [vmem:[%s670_s2] sm:$0xf] }
  0x14   :  { %149 = vmatpush.bf16.xpose.msra.mxu0 %v308_v32  ;;  %v388_v19 = vor.u32 %v432_v14, %v385_v15  ;;  %v415_v21 = vld [vmem:[%s670_s2 + $0x4] sm:$0xf0]  ;;  %v319_v22 = vld [vmem:[%s670_s2 + $0x80] sm:$0xf]  ;;  %v414_v24 = vld [vmem:[%s670_s2 + $0x4] sm:$0xf] }
  0x15   :  { %162 = vmatpush.bf16.xpose.msra.mxu1 %v340_v33  ;;  %250 = vmatpush.bf16.xpose.msra.mxu2 %v372_v34  ;;  %v431_v23 = vld [vmem:[%s670_s2 + $0x84] sm:$0xf0]  ;;  %v349_v25 = vld [vmem:[%s670_s2 + $0x8] sm:$0xf0]  ;;  %v430_v26 = vld [vmem:[%s670_s2 + $0x84] sm:$0xf]  ;;  %v288_v28 = vor.u32 %v415_v21, %v287_v20  ;;  %v50_v34 = vstv %s672_s1 }
  0x16   :  { %263 = vmatpush.bf16.xpose.msra.mxu3 %v404_v35  ;;  %v381_v27 = vld [vmem:[%s670_s2 + $0x88] sm:$0xf0]  ;;  %v320_v29 = vor.u32 %v431_v23, %v319_v22  ;;  %v352_v30 = vor.u32 %v414_v24, %v349_v25  ;;  %v15_v32 = vld [vmem:[%s671_s0] sm:$0x1]  ;;  %vm181_vm1 = vcmp.lt.s32.totalorder %v179_v36, 256 }
  0x17   :  { %v384_v31 = vor.u32 %v430_v26, %v381_v27  ;;  %v16_v33 = vpack.c.bf16 %v15_v32, %v15_v32 }
  0x1c   :  { %150 = vmatpush.bf16.xpose.msra.mxu0 %v304_v44 }
  0x1d   :  { %163 = vmatpush.bf16.xpose.msra.mxu1 %v336_v45  ;;  %251 = vmatpush.bf16.xpose.msra.mxu2 %v368_v46 }
  0x1e   :  { %264 = vmatpush.bf16.xpose.msra.mxu3 %v400_v47 }
  0x24   :  { %151 = vmatpush.bf16.xpose.msra.mxu0 %v300_v56 }
  0x25   :  { %164 = vmatpush.bf16.xpose.msra.mxu1 %v332_v57  ;;  %252 = vmatpush.bf16.xpose.msra.mxu2 %v364_v58 }
  0x26   :  { %265 = vmatpush.bf16.xpose.msra.mxu3 %v396_v59 }
  0x2c   :  { %152 = vmatpush.bf16.xpose.msra.mxu0 %v296_v4 }
  0x2d   :  { %165 = vmatpush.bf16.xpose.msra.mxu1 %v328_v5  ;;  %253 = vmatpush.bf16.xpose.msra.mxu2 %v360_v6 }
  0x2e   :  { %266 = vmatpush.bf16.xpose.msra.mxu3 %v392_v7 }
  0x34   :  { %153 = vmatpush.bf16.xpose.msra.mxu0 %v292_v16 }
  0x35   :  { %166 = vmatpush.bf16.xpose.msra.mxu1 %v324_v17  ;;  %254 = vmatpush.bf16.xpose.msra.mxu2 %v356_v18 }
  0x36   :  { %267 = vmatpush.bf16.xpose.msra.mxu3 %v388_v19 }
  0x3c   :  { %154 = vmatpush.bf16.xpose.msra.mxu0 %v288_v28 }
  0x3d   :  { %167 = vmatpush.bf16.xpose.msra.mxu1 %v320_v29  ;;  %255 = vmatpush.bf16.xpose.msra.mxu2 %v352_v30 }
  0x3e   :  { %268 = vmatpush.bf16.xpose.msra.mxu3 %v384_v31 }
  0x43   :  { %155 = vmatmul.bf16.vlgmr.msra.gmra.mxu0 %v16_v33 }
  0x44   :  { %168 = vmatmul.bf16.vlgmr.msra.gmra.mxu1 %v16_v33  ;;  %256 = vmatmul.bf16.vlgmr.msra.gmra.mxu2 %v16_v33 }
  0x45   :  { %269 = vmatmul.bf16.vlgmr.msra.gmra.mxu3 %v16_v33 }
  0xc0   :  { %v156_v35 = vpop.f32.mrf.mxu0 }
  0xc1   :  { %v169_v37 = vpop.f32.mrf.mxu1  ;;  %v157_v38 = vadd.f32 %v156_v35, %v50_v34 }
  0xc2   :  { %v170_v39 = vadd.f32 %v169_v37, %v50_v34 }
  0xc4   :  { %v175_v40 = vrot.slane %v170_v39, 7 }
  0xc6   :  { %v177_v41 = vsel %vm176_vm0, %v157_v38, %v175_v40 }
  0xc7   :  { %183 = vst.msk [vmem:[%s673_s3] ss:$2 sm:$0x3] %vm181_vm1, %v177_v41  ;;  %v257_v42 = vpop.f32.mrf.mxu2 }
  0xc8   :  { %v270_v43 = vpop.f32.mrf.mxu3  ;;  %v158_v44 = vpop.f32.mrf.mxu0  ;;  %v258_v47 = vadd.f32 %v257_v42, %v50_v34 }
  0xc9   :  { %v271_v45 = vadd.f32 %v270_v43, %v50_v34  ;;  %v171_v46 = vpop.f32.mrf.mxu1 }
  0xcb   :  { %v276_v48 = vrot.slane %v271_v45, 7 }
  0xcd   :  { %v277_v49 = vsel %vm176_vm0, %v258_v47, %v276_v48 }
  0xce   :  { %413 = vst.msk [vmem:[%s673_s3 + $0x1] ss:$2 sm:$0x3] %vm181_vm1, %v277_v49 }
  0xcf   :  { %v259_v50 = vpop.f32.mrf.mxu2 }
  0xd0   :  { %v272_v51 = vpop.f32.mrf.mxu3 }

// kernel: dgi_ind_ml_forward.8
= control target key start
LH: loop header
LB: loop body
LE: loop exit
PB: predicated region body
PF: predicated region fallthrough
CT: control target
= control target key end

     0   :  { %s604_s0 = inlined_call_operand.vmem [shape: bf16[256,256], index: 0, kind: input, shape index: {}]   ;;  %s605_s1 = inlined_call_operand.vmem [shape: f32[128,128], index: 1, kind: input, shape index: {}]   ;;  %s606_s2 = inlined_call_operand.vmem [shape: f32[1,128], index: 2, kind: output, shape index: {}]  }
   0x1   :  { %v326_v0 = vld [vmem:[%s605_s1 + $0x78] sm:$0xff]  ;;  %v325_v1 = vld [vmem:[%s605_s1 + $0x70] sm:$0xff]  ;;  %v324_v2 = vld [vmem:[%s605_s1 + $0x68] sm:$0xff] }
   0x2   :  { %327 = vmatpush.msra.mxu0 %v326_v0  ;;  %v323_v3 = vld [vmem:[%s605_s1 + $0x60] sm:$0xff]  ;;  %v322_v4 = vld [vmem:[%s605_s1 + $0x58] sm:$0xff]  ;;  %v27_v6 = vld [vmem:[%s604_s0 + $0x8] sm:$0xf] }
   0x3   :  { %v25_v5 = vld [vmem:[%s604_s0] sm:$0xf]  ;;  %v29_v7 = vld [vmem:[%s604_s0 + $0x10] sm:$0xf]  ;;  %v31_v8 = vld [vmem:[%s604_s0 + $0x18] sm:$0xf] }
   0x4   :  { %328 = vmatpush.msra.mxu0 %v325_v1  ;;  %26 = vst [vmem:[#allocation3] sm:$0xf] %v25_v5  ;;  %v33_v9 = vld [vmem:[%s604_s0 + $0x20] sm:$0xf]  ;;  %v321_v10 = vld [vmem:[%s605_s1 + $0x50] sm:$0xff]  ;;  %v320_v13 = vld [vmem:[%s605_s1 + $0x48] sm:$0xff] }
   0x5   :  { %28 = vst [vmem:[#allocation3 + $0x4] sm:$0xf] %v27_v6  ;;  %v35_v11 = vld [vmem:[%s604_s0 + $0x28] sm:$0xf]  ;;  %v37_v12 = vld [vmem:[%s604_s0 + $0x30] sm:$0xf] }
   0x6   :  { %329 = vmatpush.msra.mxu0 %v324_v2  ;;  %30 = vst [vmem:[#allocation3 + $0x8] sm:$0xf] %v29_v7  ;;  %v39_v14 = vld [vmem:[%s604_s0 + $0x38] sm:$0xf]  ;;  %v41_v15 = vld [vmem:[%s604_s0 + $0x40] sm:$0xf] }
   0x7   :  { %32 = vst [vmem:[#allocation3 + $0xc] sm:$0xf] %v31_v8  ;;  %v319_v16 = vld [vmem:[%s605_s1 + $0x40] sm:$0xff]  ;;  %v43_v17 = vld [vmem:[%s604_s0 + $0x48] sm:$0xf]  ;;  %v318_v19 = vld [vmem:[%s605_s1 + $0x38] sm:$0xff] }
   0x8   :  { %330 = vmatpush.msra.mxu0 %v323_v3  ;;  %34 = vst [vmem:[#allocation3 + $0x10] sm:$0xf] %v33_v9  ;;  %v45_v18 = vld [vmem:[%s604_s0 + $0x50] sm:$0xf]  ;;  %v47_v20 = vld [vmem:[%s604_s0 + $0x58] sm:$0xf] }
   0x9   :  { %36 = vst [vmem:[#allocation3 + $0x14] sm:$0xf] %v35_v11  ;;  %v49_v21 = vld [vmem:[%s604_s0 + $0x60] sm:$0xf]  ;;  %v317_v22 = vld [vmem:[%s605_s1 + $0x30] sm:$0xff]  ;;  %v316_v25 = vld [vmem:[%s605_s1 + $0x28] sm:$0xff] }
   0xa   :  { %331 = vmatpush.msra.mxu0 %v322_v4  ;;  %38 = vst [vmem:[#allocation3 + $0x18] sm:$0xf] %v37_v12  ;;  %v51_v23 = vld [vmem:[%s604_s0 + $0x68] sm:$0xf]  ;;  %v53_v24 = vld [vmem:[%s604_s0 + $0x70] sm:$0xf] }
   0xb   :  { %40 = vst [vmem:[#allocation3 + $0x1c] sm:$0xf] %v39_v14  ;;  %v55_v26 = vld [vmem:[%s604_s0 + $0x78] sm:$0xf]  ;;  %v57_v27 = vld [vmem:[%s604_s0 + $0x80] sm:$0xf] }
   0xc   :  { %332 = vmatpush.msra.mxu0 %v321_v10  ;;  %42 = vst [vmem:[#allocation3 + $0x20] sm:$0xf] %v41_v15  ;;  %v315_v28 = vld [vmem:[%s605_s1 + $0x20] sm:$0xff]  ;;  %v59_v29 = vld [vmem:[%s604_s0 + $0x88] sm:$0xf]  ;;  %v314_v33 = vld [vmem:[%s605_s1 + $0x18] sm:$0xff] }
   0xd   :  { %44 = vst [vmem:[#allocation3 + $0x24] sm:$0xf] %v43_v17  ;;  %v61_v30 = vld [vmem:[%s604_s0 + $0x90] sm:$0xf]  ;;  %v358_v31 = vld [vmem:[#allocation3] sm:$0xff]   ;;  %v441_v7 = vmov 0.0  }
   0xe   :  { %333 = vmatpush.msra.mxu0 %v320_v13  ;;  %46 = vst [vmem:[#allocation3 + $0x28] sm:$0xf] %v45_v18  ;;  %v421_v32 = vld [vmem:[#allocation3 + $0x8] sm:$0xff]   ;;  %v63_v34 = vld [vmem:[%s604_s0 + $0x98] sm:$0xf]  ;;  %v359_v35 = vunpack.c.l.bf16 %v358_v31  ;;  %v360_v36 = vunpack.c.h.bf16 %v358_v31  ;;  %v311_v51 = vld [vmem:[%s605_s1] sm:$0xff] }
   0xf   :  { %48 = vst [vmem:[#allocation3 + $0x2c] sm:$0xf] %v47_v20  ;;  %v363_v37 = vunpack.c.l.bf16 %v421_v32  ;;  %v65_v38 = vld [vmem:[%s604_s0 + $0xa0] sm:$0xf]  ;;  %v313_v40 = vld [vmem:[%s605_s1 + $0x10] sm:$0xff]  ;;  %v364_v42 = vunpack.c.h.bf16 %v421_v32  ;;  %v312_v45 = vld [vmem:[%s605_s1 + $0x8] sm:$0xff] }
  0x10   :  { %334 = vmatpush.msra.mxu0 %v319_v16  ;;  %50 = vst [vmem:[#allocation3 + $0x30] sm:$0xf] %v49_v21  ;;  %v422_v39 = vld [vmem:[#allocation3 + $0x10] sm:$0xff]   ;;  %v67_v41 = vld [vmem:[%s604_s0 + $0xa8] sm:$0xf]  ;;  %v248_v43 = vadd.f32 %v360_v36, %v359_v35 }
  0x11   :  { %52 = vst [vmem:[#allocation3 + $0x34] sm:$0xf] %v51_v23  ;;  %v69_v44 = vld [vmem:[%s604_s0 + $0xb0] sm:$0xf]  ;;  %v71_v46 = vld [vmem:[%s604_s0 + $0xb8] sm:$0xf]  ;;  %v367_v47 = vunpack.c.l.bf16 %v422_v39  ;;  %v368_v53 = vunpack.c.h.bf16 %v422_v39 }
  0x12   :  { %335 = vmatpush.msra.mxu0 %v318_v19  ;;  %54 = vst [vmem:[#allocation3 + $0x38] sm:$0xf] %v53_v24  ;;  %v249_v48 = vadd.f32 %v363_v37, %v248_v43  ;;  %v73_v49 = vld [vmem:[%s604_s0 + $0xc0] sm:$0xf]  ;;  %v75_v52 = vld [vmem:[%s604_s0 + $0xc8] sm:$0xf] }
  0x13   :  { %56 = vst [vmem:[#allocation3 + $0x3c] sm:$0xf] %v55_v26  ;;  %v423_v50 = vld [vmem:[#allocation3 + $0x18] sm:$0xff]   ;;  %v77_v55 = vld [vmem:[%s604_s0 + $0xd0] sm:$0xf] }
  0x14   :  { %336 = vmatpush.msra.mxu0 %v317_v22  ;;  %58 = vst [vmem:[#allocation3 + $0x40] sm:$0xf] %v57_v27  ;;  %v250_v54 = vadd.f32 %v364_v42, %v249_v48  ;;  %v79_v56 = vld [vmem:[%s604_s0 + $0xd8] sm:$0xf]  ;;  %v371_v57 = vunpack.c.l.bf16 %v423_v50  ;;  %v81_v59 = vld [vmem:[%s604_s0 + $0xe0] sm:$0xf]  ;;  %v372_v62 = vunpack.c.h.bf16 %v423_v50 }
  0x15   :  { %60 = vst [vmem:[#allocation3 + $0x44] sm:$0xf] %v59_v29  ;;  %v424_v60 = vld [vmem:[#allocation3 + $0x20] sm:$0xff]   ;;  %v85_v0 = vld [vmem:[%s604_s0 + $0xf0] sm:$0xf] }
  0x16   :  { %337 = vmatpush.msra.mxu0 %v316_v25  ;;  %62 = vst [vmem:[#allocation3 + $0x48] sm:$0xf] %v61_v30  ;;  %v251_v58 = vadd.f32 %v367_v47, %v250_v54  ;;  %v83_v61 = vld [vmem:[%s604_s0 + $0xe8] sm:$0xf]  ;;  %v87_v1 = vld [vmem:[%s604_s0 + $0xf8] sm:$0xf]  ;;  %v375_v2 = vunpack.c.l.bf16 %v424_v60  ;;  %v376_v5 = vunpack.c.h.bf16 %v424_v60 }
  0x17   :  { %64 = vst [vmem:[#allocation3 + $0x4c] sm:$0xf] %v63_v34  ;;  %v425_v4 = vld [vmem:[#allocation3 + $0x28] sm:$0xff]  }
  0x18   :  { %338 = vmatpush.msra.mxu0 %v315_v28  ;;  %66 = vst [vmem:[#allocation3 + $0x50] sm:$0xf] %v65_v38  ;;  %v252_v63 = vadd.f32 %v368_v53, %v251_v58  ;;  %v379_v8 = vunpack.c.l.bf16 %v425_v4  ;;  %v426_v10 = vld [vmem:[#allocation3 + $0x30] sm:$0xff]   ;;  %v380_v11 = vunpack.c.h.bf16 %v425_v4 }
  0x19   :  { %68 = vst [vmem:[#allocation3 + $0x54] sm:$0xf] %v67_v41  ;;  %v383_v13 = vunpack.c.l.bf16 %v426_v10  ;;  %v384_v16 = vunpack.c.h.bf16 %v426_v10 }
  0x1a   :  { %339 = vmatpush.msra.mxu0 %v314_v33  ;;  %70 = vst [vmem:[#allocation3 + $0x58] sm:$0xf] %v69_v44  ;;  %v253_v3 = vadd.f32 %v371_v57, %v252_v63  ;;  %v427_v15 = vld [vmem:[#allocation3 + $0x38] sm:$0xff]  }
  0x1b   :  { %72 = vst [vmem:[#allocation3 + $0x5c] sm:$0xf] %v71_v46  ;;  %v387_v18 = vunpack.c.l.bf16 %v427_v15  ;;  %v388_v21 = vunpack.c.h.bf16 %v427_v15 }
  0x1c   :  { %340 = vmatpush.msra.mxu0 %v313_v40  ;;  %74 = vst [vmem:[#allocation3 + $0x60] sm:$0xf] %v73_v49  ;;  %v254_v6 = vadd.f32 %v372_v62, %v253_v3  ;;  %v428_v20 = vld [vmem:[#allocation3 + $0x40] sm:$0xff]  }
  0x1d   :  { %76 = vst [vmem:[#allocation3 + $0x64] sm:$0xf] %v75_v52  ;;  %v391_v23 = vunpack.c.l.bf16 %v428_v20  ;;  %v392_v26 = vunpack.c.h.bf16 %v428_v20 }
  0x1e   :  { %341 = vmatpush.msra.mxu0 %v312_v45  ;;  %78 = vst [vmem:[#allocation3 + $0x68] sm:$0xf] %v77_v55  ;;  %v255_v9 = vadd.f32 %v375_v2, %v254_v6  ;;  %v429_v25 = vld [vmem:[#allocation3 + $0x48] sm:$0xff]  }
  0x1f   :  { %80 = vst [vmem:[#allocation3 + $0x6c] sm:$0xf] %v79_v56  ;;  %v395_v28 = vunpack.c.l.bf16 %v429_v25  ;;  %v396_v31 = vunpack.c.h.bf16 %v429_v25 }
  0x20   :  { %342 = vmatpush.msra.mxu0 %v311_v51  ;;  %82 = vst [vmem:[#allocation3 + $0x70] sm:$0xf] %v81_v59  ;;  %v256_v12 = vadd.f32 %v376_v5, %v255_v9  ;;  %v430_v30 = vld [vmem:[#allocation3 + $0x50] sm:$0xff]  }
  0x21   :  { %84 = vst [vmem:[#allocation3 + $0x74] sm:$0xf] %v83_v61  ;;  %v399_v33 = vunpack.c.l.bf16 %v430_v30  ;;  %v400_v36 = vunpack.c.h.bf16 %v430_v30 }
  0x22   :  { %86 = vst [vmem:[#allocation3 + $0x78] sm:$0xf] %v85_v0  ;;  %v257_v14 = vadd.f32 %v379_v8, %v256_v12  ;;  %v431_v35 = vld [vmem:[#allocation3 + $0x58] sm:$0xff]  }
  0x23   :  { %88 = vst [vmem:[#allocation3 + $0x7c] sm:$0xf] %v87_v1  ;;  %v403_v38 = vunpack.c.l.bf16 %v431_v35  ;;  %v404_v41 = vunpack.c.h.bf16 %v431_v35 }
  0x24   :  { %182 = vst [vmem:[#allocation2] sm:$0x1] %v441_v7  ;;  %v258_v17 = vadd.f32 %v380_v11, %v257_v14  ;;  %v432_v40 = vld [vmem:[#allocation3 + $0x60] sm:$0xff]  }
  0x25   :  { %v407_v43 = vunpack.c.l.bf16 %v432_v40  ;;  %v408_v46 = vunpack.c.h.bf16 %v432_v40 }
  0x26   :  { %v259_v19 = vadd.f32 %v383_v13, %v258_v17  ;;  %v433_v45 = vld [vmem:[#allocation3 + $0x68] sm:$0xff]  }
  0x27   :  { %v411_v48 = vunpack.c.l.bf16 %v433_v45  ;;  %v412_v51 = vunpack.c.h.bf16 %v433_v45 }
  0x28   :  { %v260_v22 = vadd.f32 %v384_v16, %v259_v19  ;;  %v434_v50 = vld [vmem:[#allocation3 + $0x70] sm:$0xff]  }
  0x29   :  { %v415_v53 = vunpack.c.l.bf16 %v434_v50  ;;  %v416_v56 = vunpack.c.h.bf16 %v434_v50 }
  0x2a   :  { %v261_v24 = vadd.f32 %v387_v18, %v260_v22  ;;  %v435_v55 = vld [vmem:[#allocation3 + $0x78] sm:$0xff]  }
  0x2b   :  { %v419_v58 = vunpack.c.l.bf16 %v435_v55  ;;  %v420_v60 = vunpack.c.h.bf16 %v435_v55  ;;  %v183_v5 = vld [vmem:[#allocation2] sm:$0x1] }
  0x2c   :  { %v262_v27 = vadd.f32 %v388_v21, %v261_v24 }
  0x2e   :  { %v263_v29 = vadd.f32 %v391_v23, %v262_v27 }
  0x30   :  { %v264_v32 = vadd.f32 %v392_v26, %v263_v29 }
  0x32   :  { %v265_v34 = vadd.f32 %v395_v28, %v264_v32 }
  0x34   :  { %v266_v37 = vadd.f32 %v396_v31, %v265_v34 }
  0x36   :  { %v267_v39 = vadd.f32 %v399_v33, %v266_v37 }
  0x38   :  { %v268_v42 = vadd.f32 %v400_v36, %v267_v39 }
  0x3a   :  { %v269_v44 = vadd.f32 %v403_v38, %v268_v42 }
  0x3c   :  { %v270_v47 = vadd.f32 %v404_v41, %v269_v44 }
  0x3e   :  { %v271_v49 = vadd.f32 %v407_v43, %v270_v47 }
  0x40   :  { %v272_v52 = vadd.f32 %v408_v46, %v271_v49 }
  0x42   :  { %v273_v54 = vadd.f32 %v411_v48, %v272_v52 }
  0x44   :  { %v274_v57 = vadd.f32 %v412_v51, %v273_v54 }
  0x46   :  { %v275_v59 = vadd.f32 %v415_v53, %v274_v57 }
  0x48   :  { %v276_v61 = vadd.f32 %v416_v56, %v275_v59 }
  0x4a   :  { %v277_v62 = vadd.f32 %v419_v58, %v276_v61 }
  0x4c   :  { %v278_v63 = vadd.f32 %v420_v60, %v277_v62 }
  0x4e   :  { %v279_v0 = vrot.slane %v278_v63, 4 }
  0x50   :  { %v280_v1 = vadd.f32 %v279_v0, %v278_v63 }
  0x52   :  { %v281_v2 = vrot.slane %v280_v1, 2 }
  0x54   :  { %v282_v3 = vadd.f32 %v281_v2, %v280_v1 }
  0x56   :  { %v283_v4 = vrot.slane %v282_v3, 1 }
  0x58   :  { %v284_v6 = vadd.f32 %v283_v4, %v282_v3 }
  0x5a   :  { %v285_v7 = vadd.f32 %v284_v6, %v183_v5 }
  0x5c   :  { %286 = vst [vmem:[#allocation2] sm:$0x1] %v285_v7 }
  0x63   :  { %v290_v8 = vld [vmem:[#allocation2] sm:$0x1] }
  0x64   :  { %v356_v9 = vmul.f32 -0.0625, %v290_v8 }
  0x66   :  { %v293_v10 = vmul.f32 1.442695, %v356_v9 }
  0x68   :  { %437 = vpow2.f32 %v293_v10 }
  0x6e   :  { %v438_v11 = vpop.eup %437 }
  0x6f   :  { %v295_v12 = vadd.f32 1.0, %v438_v11 }
  0x71   :  { %439 = vrcp.f32 %v295_v12  ;;  %v307_v15 = vand.u32 2147483648, %v295_v12  ;;  %vm301_vm0 = vweird.f32 %v295_v12  ;;  %v305_v17 = vand.u32 2147483647, %v295_v12 }
  0x73   :  { %v308_v19 = vor.u32 1.1754944e-38, %v307_v15  ;;  %vm306_vm3 = vcmp.eq.f32.partialorder %v305_v17, 8.507059e+37 }
  0x77   :  { %v440_v13 = vpop.eup %439 }
  0x78   :  { %v297_v14 = vmul.f32 %v440_v13, %v295_v12  ;;  %vm302_vm1 = vweird.f32 %v440_v13 }
  0x79   :  { %vm303_vm2 = vmor %vm301_vm0, %vm302_vm1 }
  0x7a   :  { %v298_v16 = vsub.f32 1.0, %v297_v14 }
  0x7c   :  { %v299_v18 = vmul.f32 %v440_v13, %v298_v16 }
  0x7e   :  { %v300_v20 = vadd.f32 %v440_v13, %v299_v18 }
  0x80   :  { %v304_v21 = vsel %vm303_vm2, %v440_v13, %v300_v20 }
  0x81   :  { %v309_v22 = vsel %vm306_vm3, %v308_v19, %v304_v21 }
  0x82   :  { %343 = vmatmul.f32.vlgmr.msra.gmra.mxu0 %v309_v22 }
  0xff   :  { %v344_v23 = vpop.f32.mrf.mxu0 }
 0x100   :  { %347 = vst [vmem:[%s606_s2] sm:$0x1] %v344_v23 }

// kernel: dgi_ind_ml_forward.5
= control target key start
LH: loop header
LB: loop body
LE: loop exit
PB: predicated region body
PF: predicated region fallthrough
CT: control target
= control target key end

     0   :  { %v2014_v3 = vmov 0   ;;  %s3016_s2 = inlined_call_operand.vmem [shape: bf16[256,256], index: 2, kind: input, shape index: {}]   ;;  %s3017_s1 = inlined_call_operand.vmem [shape: f32[256,1], index: 1, kind: input, shape index: {}]   ;;  %s3018_s0 = inlined_call_operand.vmem [shape: s8[256,256], index: 0, kind: input, shape index: {}]   ;;  %s3019_s3 = inlined_call_operand.vmem [shape: bf16[128,128], index: 3, kind: input, shape index: {}]   ;;  %s3020_s4 = inlined_call_operand.vmem [shape: bf16[256,256], index: 4, kind: output, shape index: {}]  }
   0x1   :  { %v1852_v0 = vld [vmem:[%s3016_s2 + $0x70] sm:$0xf]  ;;  %v1969_v1 = vld [vmem:[%s3016_s2 + $0x74] sm:$0xf0]  ;;  %2012 = vset.pattern.permute.xlu1 %v2014_v3  ;;  %2011 = vset.pattern.permute.xlu0 %v2014_v3  ;;  %v1844_v6 = vld [vmem:[%s3016_s2 + $0x60] sm:$0xf] }
   0x2   :  { %v1916_v2 = vld [vmem:[%s3016_s2 + $0xf0] sm:$0xf]  ;;  %v1853_v4 = vor.u32 %v1969_v1, %v1852_v0  ;;  %v1985_v5 = vld [vmem:[%s3016_s2 + $0xf4] sm:$0xf0]  ;;  %v1967_v7 = vld [vmem:[%s3016_s2 + $0x64] sm:$0xf0]  ;;  %2013 = vset.pattern.permute.xlu2 %v2014_v3 }
   0x3   :  { %v1917_v8 = vor.u32 %v1985_v5, %v1916_v2  ;;  %v1908_v9 = vld [vmem:[%s3016_s2 + $0xe0] sm:$0xf]  ;;  %v1983_v10 = vld [vmem:[%s3016_s2 + $0xe4] sm:$0xf0]  ;;  %v1845_v11 = vor.u32 %v1967_v7, %v1844_v6  ;;  %v1836_v13 = vld [vmem:[%s3016_s2 + $0x50] sm:$0xf] }
   0x4   :  { %517 = vmatpush.bf16.msra.mxu0 %v1853_v4  ;;  %1994 = vmatpush.bf16.msra.mxu2 %v1853_v4  ;;  %v1909_v12 = vor.u32 %v1983_v10, %v1908_v9  ;;  %v1965_v14 = vld [vmem:[%s3016_s2 + $0x54] sm:$0xf0]  ;;  %v1086_v15 = vld [vmem:[%s3017_s1 + $0x10] sm:$0xff]  ;;  %v1084_v19 = vld [vmem:[%s3017_s1] sm:$0xff] }
   0x5   :  { %606 = vmatpush.bf16.msra.mxu1 %v1917_v8  ;;  %2002 = vmatpush.bf16.msra.mxu3 %v1917_v8  ;;  %v1900_v16 = vld [vmem:[%s3016_s2 + $0xd0] sm:$0xf]  ;;  %v1981_v17 = vld [vmem:[%s3016_s2 + $0xd4] sm:$0xf0]  ;;  %v1837_v18 = vor.u32 %v1965_v14, %v1836_v13  ;;  %v1828_v21 = vld [vmem:[%s3016_s2 + $0x40] sm:$0xf] }
   0x6   :  { %1128 = vperm.xlu1 %2012, %v1086_v15   ;;  %v1901_v20 = vor.u32 %v1981_v17, %v1900_v16  ;;  %v1963_v22 = vld [vmem:[%s3016_s2 + $0x44] sm:$0xf0]  ;;  %v1892_v23 = vld [vmem:[%s3016_s2 + $0xc0] sm:$0xf]  ;;  %1118 = vperm.xlu0 %2011, %v1084_v19   ;;  %v1087_v25 = vld [vmem:[%s3017_s1 + $0x18] sm:$0xff] }
   0x7   :  { %v1979_v24 = vld [vmem:[%s3016_s2 + $0xc4] sm:$0xf0]  ;;  %v1829_v26 = vor.u32 %v1963_v22, %v1828_v21  ;;  %v1820_v28 = vld [vmem:[%s3016_s2 + $0x30] sm:$0xf]  ;;  %v1961_v29 = vld [vmem:[%s3016_s2 + $0x34] sm:$0xf0] }
   0x8   :  { %518 = vmatpush.bf16.msra.mxu0 %v1845_v11  ;;  %1995 = vmatpush.bf16.msra.mxu2 %v1845_v11  ;;  %v1893_v27 = vor.u32 %v1979_v24, %v1892_v23  ;;  %v1884_v30 = vld [vmem:[%s3016_s2 + $0xb0] sm:$0xf]  ;;  %v1977_v31 = vld [vmem:[%s3016_s2 + $0xb4] sm:$0xf0]  ;;  %v1085_v32 = vld [vmem:[%s3017_s1 + $0x8] sm:$0xff]  ;;  %v1821_v33 = vor.u32 %v1961_v29, %v1820_v28 }
   0x9   :  { %607 = vmatpush.bf16.msra.mxu1 %v1909_v12  ;;  %2003 = vmatpush.bf16.msra.mxu3 %v1909_v12  ;;  %v1088_v34 = vld [vmem:[%s3017_s1 + $0x20] sm:$0xff]  ;;  %v1885_v35 = vor.u32 %v1977_v31, %v1884_v30  ;;  %v1959_v37 = vld [vmem:[%s3016_s2 + $0x24] sm:$0xf0]  ;;  %v1804_v40 = vld [vmem:[%s3016_s2 + $0x10] sm:$0xf] }
   0xa   :  { %v1812_v36 = vld [vmem:[%s3016_s2 + $0x20] sm:$0xf]  ;;  %v1975_v39 = vld [vmem:[%s3016_s2 + $0xa4] sm:$0xf0]  ;;  %1138 = vperm.xlu2 %2013, %v1088_v34   ;;  %v1957_v41 = vld [vmem:[%s3016_s2 + $0x14] sm:$0xf0] }
   0xb   :  { %v1876_v38 = vld [vmem:[%s3016_s2 + $0xa0] sm:$0xf]  ;;  %v1091_v42 = vld [vmem:[%s3017_s1 + $0x38] sm:$0xff]  ;;  %v1813_v43 = vor.u32 %v1959_v37, %v1812_v36  ;;  %v2149_v47 = vld [vmem:[%s3018_s0 + $0x8] sm:$0xff]  ;;  %v1805_v49 = vor.u32 %v1957_v41, %v1804_v40 }
   0xc   :  { %519 = vmatpush.bf16.msra.mxu0 %v1837_v18  ;;  %1996 = vmatpush.bf16.msra.mxu2 %v1837_v18  ;;  %v2139_v44 = vld [vmem:[%s3018_s0] sm:$0xff]  ;;  %v1877_v46 = vor.u32 %v1975_v39, %v1876_v38  ;;  %v2154_v48 = vld [vmem:[%s3018_s0 + $0x48] sm:$0xff]  ;;  %v1868_v50 = vld [vmem:[%s3016_s2 + $0x90] sm:$0xf]  ;;  %v102_v60 = vunpack.c.0.s8 %v2149_v47  ;;  %v104_v61 = vunpack.c.1.s8 %v2149_v47 }
   0xd   :  { %608 = vmatpush.bf16.msra.mxu1 %v1901_v20  ;;  %2004 = vmatpush.bf16.msra.mxu3 %v1901_v20  ;;  %v2144_v45 = vld [vmem:[%s3018_s0 + $0x40] sm:$0xff]  ;;  %v1973_v51 = vld [vmem:[%s3016_s2 + $0x94] sm:$0xf0]  ;;  %v1955_v53 = vld [vmem:[%s3016_s2 + $0x4] sm:$0xf0]  ;;  %v101_v54 = vunpack.c.0.s8 %v2139_v44  ;;  %v103_v55 = vunpack.c.1.s8 %v2139_v44  ;;  %v134_v62 = vunpack.c.0.s8 %v2154_v48  ;;  %v136_v63 = vunpack.c.1.s8 %v2154_v48 }
   0xe   :  { %1133 = vperm.xlu1 %2012, %v1087_v25   ;;  %1123 = vperm.xlu0 %2011, %v1085_v32   ;;  %v1796_v52 = vld [vmem:[%s3016_s2] sm:$0xf]  ;;  %v133_v56 = vunpack.c.0.s8 %v2144_v45  ;;  %v135_v57 = vunpack.c.1.s8 %v2144_v45  ;;  %v1090_v58 = vld [vmem:[%s3017_s1 + $0x30] sm:$0xff]  ;;  %v1089_v59 = vld [vmem:[%s3017_s1 + $0x28] sm:$0xff]  ;;  %v1869_v0 = vor.u32 %v1973_v51, %v1868_v50  ;;  %v166_v13 = vcvt.s32.f32 %v102_v60 }
   0xf   :  { %v1860_v1 = vld [vmem:[%s3016_s2 + $0x80] sm:$0xf]  ;;  %v1797_v2 = vor.u32 %v1955_v53, %v1796_v52  ;;  %v1971_v3 = vld [vmem:[%s3016_s2 + $0x84] sm:$0xf0]  ;;  %v1968_v4 = vld [vmem:[%s3016_s2 + $0x74] sm:$0xf]  ;;  %v165_v6 = vcvt.s32.f32 %v101_v54  ;;  %v167_v7 = vcvt.s32.f32 %v103_v55  ;;  %v168_v14 = vcvt.s32.f32 %v104_v61 }
  0x10   :  { %520 = vmatpush.bf16.msra.mxu0 %v1829_v26  ;;  %1997 = vmatpush.bf16.msra.mxu2 %v1829_v26  ;;  %v1854_v5 = vld [vmem:[%s3016_s2 + $0x78] sm:$0xf0]  ;;  %v197_v8 = vcvt.s32.f32 %v133_v56  ;;  %v199_v9 = vcvt.s32.f32 %v135_v57  ;;  %v1984_v10 = vld [vmem:[%s3016_s2 + $0xf4] sm:$0xf]  ;;  %v198_v15 = vcvt.s32.f32 %v134_v62  ;;  %v200_v16 = vcvt.s32.f32 %v136_v63  ;;  %v1966_v22 = vld [vmem:[%s3016_s2 + $0x64] sm:$0xf] }
  0x11   :  { %609 = vmatpush.bf16.msra.mxu1 %v1893_v27  ;;  %2005 = vmatpush.bf16.msra.mxu3 %v1893_v27  ;;  %v1918_v11 = vld [vmem:[%s3016_s2 + $0xf8] sm:$0xf0]  ;;  %v1094_v12 = vld [vmem:[%s3017_s1 + $0x50] sm:$0xff]  ;;  %v1861_v17 = vor.u32 %v1971_v3, %v1860_v1  ;;  %v1857_v18 = vor.u32 %v1968_v4, %v1854_v5  ;;  %v2203_v20 = vpack.c.bf16 %v167_v7, %v165_v6  ;;  %v1846_v23 = vld [vmem:[%s3016_s2 + $0x68] sm:$0xf0]  ;;  %v105_v37 = vunpack.c.2.s8 %v2139_v44 }
  0x12   :  { %1143 = vperm.xlu2 %2013, %v1089_v59   ;;  %v1921_v19 = vor.u32 %v1984_v10, %v1918_v11  ;;  %v2205_v21 = vpack.c.bf16 %v199_v9, %v197_v8  ;;  %v2213_v24 = vpack.c.bf16 %v168_v14, %v166_v13  ;;  %v2215_v25 = vpack.c.bf16 %v200_v16, %v198_v15  ;;  %v1982_v26 = vld [vmem:[%s3016_s2 + $0xe4] sm:$0xf]  ;;  %v1910_v27 = vld [vmem:[%s3016_s2 + $0xe8] sm:$0xf0]  ;;  %v1838_v34 = vld [vmem:[%s3016_s2 + $0x58] sm:$0xf0] }
  0x13   :  { %v1093_v28 = vld [vmem:[%s3017_s1 + $0x48] sm:$0xff]  ;;  %v1849_v29 = vor.u32 %v1966_v22, %v1846_v23  ;;  %v1092_v30 = vld [vmem:[%s3017_s1 + $0x40] sm:$0xff]  ;;  %v1913_v32 = vor.u32 %v1982_v26, %v1910_v27  ;;  %v1902_v36 = vld [vmem:[%s3016_s2 + $0xd8] sm:$0xf0]  ;;  %v107_v39 = vunpack.c.3.s8 %v2139_v44  ;;  %v137_v40 = vunpack.c.2.s8 %v2144_v45 }
  0x14   :  { %521 = vmatpush.bf16.msra.mxu0 %v1821_v33  ;;  %1998 = vmatpush.bf16.msra.mxu2 %v1821_v33  ;;  %v1097_v31 = vld [vmem:[%s3017_s1 + $0x68] sm:$0xff]  ;;  %v1964_v33 = vld [vmem:[%s3016_s2 + $0x54] sm:$0xf]  ;;  %v139_v41 = vunpack.c.3.s8 %v2144_v45  ;;  %v140_v50 = vunpack.c.3.s8 %v2154_v48  ;;  %v1096_v51 = vld [vmem:[%s3017_s1 + $0x60] sm:$0xff]  ;;  %v169_v45 = vcvt.s32.f32 %v105_v37 }
  0x15   :  { %610 = vmatpush.bf16.msra.mxu1 %v1885_v35  ;;  %2006 = vmatpush.bf16.msra.mxu3 %v1885_v35  ;;  %v1980_v35 = vld [vmem:[%s3016_s2 + $0xd4] sm:$0xf]  ;;  %v1841_v38 = vor.u32 %v1964_v33, %v1838_v34  ;;  %v1095_v44 = vld [vmem:[%s3017_s1 + $0x58] sm:$0xff]  ;;  %v171_v52 = vcvt.s32.f32 %v107_v39  ;;  %v201_v53 = vcvt.s32.f32 %v137_v40  ;;  %v1962_v3 = vld [vmem:[%s3016_s2 + $0x44] sm:$0xf] }
  0x16   :  { %1153 = vperm.xlu1 %2012, %v1091_v42   ;;  %1148 = vperm.xlu0 %2011, %v1090_v58   ;;  %v1905_v42 = vor.u32 %v1980_v35, %v1902_v36  ;;  %v203_v54 = vcvt.s32.f32 %v139_v41  ;;  %v204_v57 = vcvt.s32.f32 %v140_v50  ;;  %v1099_v62 = vld [vmem:[%s3017_s1 + $0x78] sm:$0xff]  ;;  %v1098_v63 = vld [vmem:[%s3017_s1 + $0x70] sm:$0xff]  ;;  %v1830_v4 = vld [vmem:[%s3016_s2 + $0x48] sm:$0xf0] }
  0x17   :  { %v2265_v58 = vpack.c.bf16 %v171_v52, %v169_v45  ;;  %v2289_v1 = vld [vmem:[%s3018_s0 + $0x50] sm:$0xff]  ;;  %v1978_v5 = vld [vmem:[%s3016_s2 + $0xc4] sm:$0xf]  ;;  %v2308_v6 = vld [vmem:[%s3018_s0 + $0x18] sm:$0xff]  ;;  %v1833_v8 = vor.u32 %v1962_v3, %v1830_v4 }
  0x18   :  { %522 = vmatpush.bf16.msra.mxu0 %v1813_v43  ;;  %1999 = vmatpush.bf16.msra.mxu2 %v1813_v43  ;;  %v106_v43 = vunpack.c.2.s8 %v2149_v47  ;;  %v2267_v59 = vpack.c.bf16 %v203_v54, %v201_v53  ;;  %v2313_v7 = vld [vmem:[%s3018_s0 + $0x58] sm:$0xff]  ;;  %v1894_v9 = vld [vmem:[%s3016_s2 + $0xc8] sm:$0xf0]  ;;  %v141_v13 = vunpack.c.0.s8 %v2289_v1  ;;  %v143_v14 = vunpack.c.1.s8 %v2289_v1  ;;  %v1976_v40 = vld [vmem:[%s3016_s2 + $0xb4] sm:$0xf] }
  0x19   :  { %611 = vmatpush.bf16.msra.mxu1 %v1877_v46  ;;  %2007 = vmatpush.bf16.msra.mxu3 %v1877_v46  ;;  %v108_v46 = vunpack.c.3.s8 %v2149_v47  ;;  %v1100_v47 = vld [vmem:[%s3017_s1 + $0x80] sm:$0xff]  ;;  %v1897_v10 = vor.u32 %v1978_v5, %v1894_v9  ;;  %v110_v15 = vunpack.c.0.s8 %v2308_v6  ;;  %v112_v16 = vunpack.c.1.s8 %v2308_v6  ;;  %v1101_v22 = vld [vmem:[%s3017_s1 + $0x88] sm:$0xff]  ;;  %v1822_v39 = vld [vmem:[%s3016_s2 + $0x38] sm:$0xf0] }
  0x1a   :  { %1158 = vperm.xlu2 %2013, %v1092_v30   ;;  %v170_v55 = vcvt.s32.f32 %v106_v43  ;;  %v205_v27 = vcvt.s32.f32 %v141_v13  ;;  %v1105_v37 = vld [vmem:[%s3017_s1 + $0xa8] sm:$0xff]  ;;  %v1106_v43 = vld [vmem:[%s3017_s1 + $0xb0] sm:$0xff]  ;;  %v147_v45 = vunpack.c.3.s8 %v2289_v1  ;;  %v114_v52 = vunpack.c.2.s8 %v2308_v6 }
  0x1b   :  { %v176_v30 = vcvt.s32.f32 %v112_v16  ;;  %v116_v53 = vunpack.c.3.s8 %v2308_v6  ;;  %v146_v54 = vunpack.c.2.s8 %v2313_v7  ;;  %v2384_v6 = vld [vmem:[%s3018_s0 + $0x20] sm:$0xff]  ;;  %v2401_v9 = vld [vmem:[%s3018_s0 + $0x68] sm:$0xff] }
  0x1c   :  { %523 = vmatpush.bf16.msra.mxu0 %v1805_v49  ;;  %2000 = vmatpush.bf16.msra.mxu2 %v1805_v49  ;;  %v138_v49 = vunpack.c.2.s8 %v2154_v48  ;;  %v172_v48 = vcvt.s32.f32 %v108_v46  ;;  %v1104_v46 = vld [vmem:[%s3017_s1 + $0xa0] sm:$0xff]  ;;  %v1109_v16 = vld [vmem:[%s3017_s1 + $0xc8] sm:$0xff] }
  0x1d   :  { %612 = vmatpush.bf16.msra.mxu1 %v1869_v0  ;;  %2008 = vmatpush.bf16.msra.mxu3 %v1869_v0  ;;  %v2284_v0 = vld [vmem:[%s3018_s0 + $0x10] sm:$0xff] }
  0x1e   :  { %1168 = vperm.xlu1 %2012, %v1094_v12   ;;  %1163 = vperm.xlu0 %2011, %v1093_v28   ;;  %v202_v56 = vcvt.s32.f32 %v138_v49  ;;  %v2269_v60 = vpack.c.bf16 %v172_v48, %v170_v55  ;;  %v109_v11 = vunpack.c.0.s8 %v2284_v0  ;;  %v111_v12 = vunpack.c.1.s8 %v2284_v0 }
  0x1f   :  { %v207_v28 = vcvt.s32.f32 %v143_v14  ;;  %v113_v50 = vunpack.c.2.s8 %v2284_v0  ;;  %v1878_v14 = vld [vmem:[%s3016_s2 + $0xa8] sm:$0xf0] }
  0x20   :  { %524 = vmatpush.bf16.msra.mxu0 %v1797_v2  ;;  %2001 = vmatpush.bf16.msra.mxu2 %v1797_v2  ;;  %v2271_v61 = vpack.c.bf16 %v204_v57, %v202_v56  ;;  %v1103_v2 = vld [vmem:[%s3017_s1 + $0x98] sm:$0xff]  ;;  %v173_v23 = vcvt.s32.f32 %v109_v11  ;;  %v175_v26 = vcvt.s32.f32 %v111_v12  ;;  %v211_v57 = vcvt.s32.f32 %v147_v45  ;;  %v1814_v11 = vld [vmem:[%s3016_s2 + $0x28] sm:$0xf0]  ;;  %v1974_v12 = vld [vmem:[%s3016_s2 + $0xa4] sm:$0xf] }
  0x21   :  { %613 = vmatpush.bf16.msra.mxu1 %v1861_v17  ;;  %2009 = vmatpush.bf16.msra.mxu3 %v1861_v17  ;;  %v142_v17 = vunpack.c.0.s8 %v2313_v7  ;;  %v2334_v34 = vpack.c.bf16 %v207_v28, %v205_v27  ;;  %v177_v55 = vcvt.s32.f32 %v113_v50  ;;  %v150_v28 = vunpack.c.0.s8 %v2401_v9  ;;  %v1956_v50 = vld [vmem:[%s3016_s2 + $0x14] sm:$0xf] }
  0x22   :  { %1173 = vperm.xlu2 %2013, %v1095_v44   ;;  %v2332_v33 = vpack.c.bf16 %v175_v26, %v173_v23  ;;  %v145_v44 = vunpack.c.2.s8 %v2289_v1 }
  0x23   :  { %525 = vmatmul.bf16.vlgmr.msra.gmra.mxu0 %v2203_v20  ;;  %565 = vmatmul.bf16.vlgmr.msra.gmra.mxu2 %v2205_v21 }
  0x24   :  { %695 = vmatpush.bf16.msrb.mxu2 %v1857_v18  ;;  %614 = vmatmul.bf16.vlgmr.msra.gmra.mxu1 %v2213_v24  ;;  %v144_v18 = vunpack.c.1.s8 %v2313_v7  ;;  %v209_v56 = vcvt.s32.f32 %v145_v44  ;;  %v1972_v44 = vld [vmem:[%s3016_s2 + $0x94] sm:$0xf] }
  0x25   :  { %784 = vmatpush.bf16.msrb.mxu3 %v1921_v19  ;;  %v1102_v19 = vld [vmem:[%s3017_s1 + $0x90] sm:$0xff] }
  0x26   :  { %654 = vmatmul.bf16.vlgmr.msra.gmra.mxu3 %v2215_v25  ;;  %1183 = vperm.xlu1 %2012, %v1097_v31   ;;  %v206_v31 = vcvt.s32.f32 %v142_v17  ;;  %v2375_v1 = vpack.c.bf16 %v211_v57, %v209_v56  ;;  %v1881_v17 = vor.u32 %v1974_v12, %v1878_v14  ;;  %v123_v56 = vunpack.c.3.s8 %v2384_v6 }
  0x27   :  { %1178 = vperm.xlu0 %2011, %v1096_v51   ;;  %v115_v51 = vunpack.c.3.s8 %v2284_v0  ;;  %v210_v0 = vcvt.s32.f32 %v146_v54  ;;  %v1111_v54 = vld [vmem:[%s3017_s1 + $0xd8] sm:$0xff] }
  0x28   :  { %696 = vmatpush.bf16.msrb.mxu2 %v1849_v29  ;;  %v174_v29 = vcvt.s32.f32 %v110_v15  ;;  %v1108_v15 = vld [vmem:[%s3017_s1 + $0xc0] sm:$0xff]  ;;  %v187_v12 = vcvt.s32.f32 %v123_v56 }
  0x29   :  { %785 = vmatpush.bf16.msrb.mxu3 %v1913_v32  ;;  %v208_v32 = vcvt.s32.f32 %v144_v18  ;;  %v179_v48 = vcvt.s32.f32 %v115_v51  ;;  %v117_v18 = vunpack.c.0.s8 %v2384_v6  ;;  %v1806_v51 = vld [vmem:[%s3016_s2 + $0x18] sm:$0xf0] }
  0x2a   :  { %1188 = vperm.xlu2 %2013, %v1098_v63   ;;  %v2336_v35 = vpack.c.bf16 %v176_v30, %v174_v29  ;;  %v180_v63 = vcvt.s32.f32 %v116_v53  ;;  %v152_v29 = vunpack.c.1.s8 %v2401_v9  ;;  %v1809_v45 = vor.u32 %v1956_v50, %v1806_v51  ;;  %v1107_v53 = vld [vmem:[%s3017_s1 + $0xb8] sm:$0xff] }
  0x2b   :  { %v2338_v36 = vpack.c.bf16 %v208_v32, %v206_v31  ;;  %v2373_v3 = vpack.c.bf16 %v179_v48, %v177_v55  ;;  %v181_v30 = vcvt.s32.f32 %v117_v18  ;;  %v1993_v55 = vld [vmem:[%s3019_s3 + $0x38] sm:$0xff]  ;;  %v121_v48 = vunpack.c.2.s8 %v2384_v6 }
  0x2c   :  { %697 = vmatpush.bf16.msrb.mxu2 %v1841_v38  ;;  %v1960_v38 = vld [vmem:[%s3016_s2 + $0x34] sm:$0xf]  ;;  %1404 = vmatpush.bf16.msrb.mxu0 %v1993_v55 }
  0x2d   :  { %786 = vmatpush.bf16.msrb.mxu3 %v1905_v42  ;;  %v1825_v41 = vor.u32 %v1960_v38, %v1822_v39  ;;  %v1886_v42 = vld [vmem:[%s3016_s2 + $0xb8] sm:$0xf0]  ;;  %1541 = vmatpush.bf16.msrb.mxu1 %v1993_v55 }
  0x2e   :  { %1198 = vperm.xlu1 %2012, %v1100_v47   ;;  %v1889_v49 = vor.u32 %v1976_v40, %v1886_v42  ;;  %v148_v47 = vunpack.c.3.s8 %v2313_v7  ;;  %v2391_v7 = vld [vmem:[%s3018_s0 + $0x60] sm:$0xff]  ;;  %v214_v40 = vcvt.s32.f32 %v150_v28 }
  0x2f   :  { %1193 = vperm.xlu0 %2011, %v1099_v62   ;;  %v178_v62 = vcvt.s32.f32 %v114_v52  ;;  %v151_v23 = vunpack.c.1.s8 %v2391_v7  ;;  %v1870_v52 = vld [vmem:[%s3016_s2 + $0x98] sm:$0xf0]  ;;  %v153_v57 = vunpack.c.2.s8 %v2391_v7  ;;  %v1954_v28 = vld [vmem:[%s3016_s2 + $0x4] sm:$0xf] }
  0x30   :  { %698 = vmatpush.bf16.msrb.mxu2 %v1833_v8  ;;  %v2396_v8 = vld [vmem:[%s3018_s0 + $0x28] sm:$0xff] }
  0x31   :  { %787 = vmatpush.bf16.msrb.mxu3 %v1897_v10  ;;  %v2377_v4 = vpack.c.bf16 %v180_v63, %v178_v62  ;;  %v1958_v10 = vld [vmem:[%s3016_s2 + $0x24] sm:$0xf]  ;;  %v118_v26 = vunpack.c.0.s8 %v2396_v8  ;;  %v120_v27 = vunpack.c.1.s8 %v2396_v8  ;;  %v155_v62 = vunpack.c.3.s8 %v2391_v7 }
  0x32   :  { %1203 = vperm.xlu2 %2013, %v1101_v22   ;;  %v1817_v13 = vor.u32 %v1958_v10, %v1814_v11  ;;  %v149_v22 = vunpack.c.0.s8 %v2391_v7  ;;  %v122_v63 = vunpack.c.2.s8 %v2396_v8  ;;  %v156_v10 = vunpack.c.3.s8 %v2401_v9 }
  0x33   :  { %530 = vmatmul.bf16.gmra.mxu0 %v2265_v58  ;;  %570 = vmatmul.bf16.gmra.mxu2 %v2267_v59  ;;  %v182_v38 = vcvt.s32.f32 %v118_v26  ;;  %v184_v39 = vcvt.s32.f32 %v120_v27  ;;  %v185_v11 = vcvt.s32.f32 %v121_v48  ;;  %v2500_v26 = vld [vmem:[%s3018_s0 + $0x78] sm:$0xff]  ;;  %v1992_v27 = vld [vmem:[%s3019_s3 + $0x30] sm:$0xff] }
  0x34   :  { %619 = vmatmul.bf16.gmra.mxu1 %v2269_v60  ;;  %699 = vmatpush.bf16.msrb.mxu2 %v1825_v41  ;;  %v213_v32 = vcvt.s32.f32 %v149_v22  ;;  %v216_v41 = vcvt.s32.f32 %v152_v29  ;;  %v186_v14 = vcvt.s32.f32 %v122_v63  ;;  %v220_v7 = vcvt.s32.f32 %v156_v10  ;;  %v2488_v22 = vld [vmem:[%s3018_s0 + $0x70] sm:$0xff]  ;;  %v1798_v29 = vld [vmem:[%s3016_s2 + $0x8] sm:$0xf0] }
  0x35   :  { %788 = vmatpush.bf16.msrb.mxu3 %v1889_v49  ;;  %1405 = vmatpush.bf16.msrb.mxu0 %v1992_v27  ;;  %v157_v51 = vunpack.c.0.s8 %v2488_v22 }
  0x36   :  { %659 = vmatmul.bf16.gmra.mxu3 %v2271_v61  ;;  %1213 = vperm.xlu1 %2012, %v1103_v2   ;;  %v212_v2 = vcvt.s32.f32 %v148_v47  ;;  %v2437_v49 = vpack.c.bf16 %v216_v41, %v214_v40  ;;  %v1873_v47 = vor.u32 %v1972_v44, %v1870_v52  ;;  %v1110_v40 = vld [vmem:[%s3017_s1 + $0xd0] sm:$0xff]  ;;  %v159_v44 = vunpack.c.1.s8 %v2488_v22 }
  0x37   :  { %1208 = vperm.xlu0 %2011, %v1102_v19   ;;  %v119_v19 = vunpack.c.1.s8 %v2384_v6  ;;  %v219_v6 = vcvt.s32.f32 %v155_v62  ;;  %1542 = vmatpush.bf16.msrb.mxu1 %v1992_v27  ;;  %v221_v56 = vcvt.s32.f32 %v157_v51  ;;  %v1114_v27 = vld [vmem:[%s3017_s1 + $0xf0] sm:$0xff] }
  0x38   :  { %v2379_v5 = vpack.c.bf16 %v212_v2, %v210_v0  ;;  %700 = vmatpush.bf16.msrb.mxu2 %v1817_v13  ;;  %v124_v0 = vunpack.c.3.s8 %v2396_v8  ;;  %v154_v2 = vunpack.c.2.s8 %v2401_v9  ;;  %v217_v13 = vcvt.s32.f32 %v153_v57  ;;  %v2483_v9 = vld [vmem:[%s3018_s0 + $0x30] sm:$0xff] }
  0x39   :  { %789 = vmatpush.bf16.msrb.mxu3 %v1881_v17  ;;  %v183_v31 = vcvt.s32.f32 %v119_v19  ;;  %v2472_v17 = vpack.c.bf16 %v187_v12, %v185_v11  ;;  %v125_v41 = vunpack.c.0.s8 %v2483_v9  ;;  %v127_v50 = vunpack.c.1.s8 %v2483_v9  ;;  %v1989_v12 = vld [vmem:[%s3019_s3 + $0x18] sm:$0xff] }
  0x3a   :  { %1218 = vperm.xlu2 %2013, %v1104_v46   ;;  %v2435_v46 = vpack.c.bf16 %v184_v39, %v182_v38  ;;  %v2474_v18 = vpack.c.bf16 %v219_v6, %v217_v13  ;;  %v1991_v38 = vld [vmem:[%s3019_s3 + $0x28] sm:$0xff]  ;;  %v223_v57 = vcvt.s32.f32 %v159_v44 }
  0x3b   :  { %v2431_v42 = vpack.c.bf16 %v183_v31, %v181_v30  ;;  %v1970_v30 = vld [vmem:[%s3016_s2 + $0x84] sm:$0xf]  ;;  %v1801_v31 = vor.u32 %v1954_v28, %v1798_v29  ;;  %1406 = vmatpush.bf16.msrb.mxu0 %v1991_v38  ;;  %1543 = vmatpush.bf16.msrb.mxu1 %v1991_v38  ;;  %v189_v55 = vcvt.s32.f32 %v125_v41  ;;  %v191_v48 = vcvt.s32.f32 %v127_v50  ;;  %v1987_v38 = vld [vmem:[%s3019_s3 + $0x8] sm:$0xff] }
  0x3c   :  { %701 = vmatpush.bf16.msrb.mxu2 %v1809_v45  ;;  %v2548_v6 = vpack.c.bf16 %v223_v57, %v221_v56  ;;  %v162_v41 = vunpack.c.2.s8 %v2500_v26  ;;  %v164_v50 = vunpack.c.3.s8 %v2500_v26 }
  0x3d   :  { %790 = vmatpush.bf16.msrb.mxu3 %v1873_v47  ;;  %v1990_v47 = vld [vmem:[%s3019_s3 + $0x20] sm:$0xff]  ;;  %v2546_v13 = vpack.c.bf16 %v191_v48, %v189_v55 }
  0x3e   :  { %1228 = vperm.xlu1 %2012, %v1106_v43  }
  0x3f   :  { %1223 = vperm.xlu0 %2011, %v1105_v37   ;;  %v215_v37 = vcvt.s32.f32 %v151_v23  ;;  %v2495_v23 = vld [vmem:[%s3018_s0 + $0x38] sm:$0xff]  ;;  %1407 = vmatpush.bf16.msrb.mxu0 %v1990_v47 }
  0x40   :  { %702 = vmatpush.bf16.msrb.mxu2 %v1801_v31  ;;  %v126_v45 = vunpack.c.0.s8 %v2495_v23  ;;  %v128_v52 = vunpack.c.1.s8 %v2495_v23  ;;  %1544 = vmatpush.bf16.msrb.mxu1 %v1990_v47  ;;  %v131_v31 = vunpack.c.3.s8 %v2483_v9  ;;  %v228_v47 = vcvt.s32.f32 %v164_v50 }
  0x41   :  { %v2433_v43 = vpack.c.bf16 %v215_v37, %v213_v32  ;;  %v1862_v32 = vld [vmem:[%s3016_s2 + $0x88] sm:$0xf0]  ;;  %v1112_v37 = vld [vmem:[%s3017_s1 + $0xe0] sm:$0xff] }
  0x42   :  { %1233 = vperm.xlu2 %2013, %v1107_v53   ;;  %v1865_v39 = vor.u32 %v1970_v30, %v1862_v32  ;;  %v158_v53 = vunpack.c.0.s8 %v2500_v26  ;;  %v190_v62 = vcvt.s32.f32 %v126_v45  ;;  %v192_v63 = vcvt.s32.f32 %v128_v52 }
  0x43   :  { %535 = vmatmul.bf16.gmra.mxu0 %v2332_v33  ;;  %575 = vmatmul.bf16.gmra.mxu2 %v2334_v34  ;;  %v129_v30 = vunpack.c.2.s8 %v2483_v9  ;;  %v161_v32 = vunpack.c.2.s8 %v2488_v22  ;;  %v195_v9 = vcvt.s32.f32 %v131_v31 }
  0x44   :  { %624 = vmatmul.bf16.gmra.mxu1 %v2336_v35  ;;  %791 = vmatpush.bf16.msrb.mxu3 %v1865_v39  ;;  %v130_v39 = vunpack.c.2.s8 %v2495_v23 }
  0x45   :  { %1408 = vmatpush.bf16.msrb.mxu0 %v1989_v12  ;;  %1545 = vmatpush.bf16.msrb.mxu1 %v1989_v12  ;;  %v193_v51 = vcvt.s32.f32 %v129_v30  ;;  %v225_v44 = vcvt.s32.f32 %v161_v32 }
  0x46   :  { %664 = vmatmul.bf16.gmra.mxu3 %v2338_v36  ;;  %1243 = vperm.xlu1 %2012, %v1109_v16   ;;  %v218_v16 = vcvt.s32.f32 %v154_v2  ;;  %v194_v52 = vcvt.s32.f32 %v130_v39 }
  0x47   :  { %1238 = vperm.xlu0 %2011, %v1108_v15   ;;  %v188_v15 = vcvt.s32.f32 %v124_v0  ;;  %v222_v0 = vcvt.s32.f32 %v158_v53 }
  0x48   :  { %v2478_v19 = vpack.c.bf16 %v220_v7, %v218_v16  ;;  %v1988_v7 = vld [vmem:[%s3019_s3 + $0x10] sm:$0xff] }
  0x49   :  { %v2476_v8 = vpack.c.bf16 %v188_v15, %v186_v14  ;;  %v2550_v14 = vpack.c.bf16 %v192_v63, %v190_v62  ;;  %1409 = vmatpush.bf16.msrb.mxu0 %v1988_v7  ;;  %1546 = vmatpush.bf16.msrb.mxu1 %v1988_v7 }
  0x4a   :  { %1248 = vperm.xlu2 %2013, %v1110_v40   ;;  %v132_v40 = vunpack.c.3.s8 %v2495_v23  ;;  %v1115_v23 = vld [vmem:[%s3017_s1 + $0xf8] sm:$0xff] }
  0x4c   :  { %v196_v53 = vcvt.s32.f32 %v132_v40 }
  0x4d   :  { %1410 = vmatpush.bf16.msrb.mxu0 %v1987_v38  ;;  %1547 = vmatpush.bf16.msrb.mxu1 %v1987_v38 }
  0x4e   :  { %1258 = vperm.xlu1 %2012, %v1112_v37   ;;  %v163_v37 = vunpack.c.3.s8 %v2488_v22  ;;  %v1986_v22 = vld [vmem:[%s3019_s3] sm:$0xff]  ;;  %v2593_v56 = vpack.c.bf16 %v196_v53, %v194_v52 }
  0x4f   :  { %1253 = vperm.xlu0 %2011, %v1111_v54   ;;  %v160_v54 = vunpack.c.1.s8 %v2500_v26  ;;  %v2589_v26 = vpack.c.bf16 %v195_v9, %v193_v51 }
  0x50   :  { %v227_v45 = vcvt.s32.f32 %v163_v37 }
  0x51   :  { %v224_v2 = vcvt.s32.f32 %v160_v54  ;;  %v226_v54 = vcvt.s32.f32 %v162_v41  ;;  %1411 = vmatpush.bf16.msrb.mxu0 %v1986_v22  ;;  %1548 = vmatpush.bf16.msrb.mxu1 %v1986_v22 }
  0x52   :  { %v2591_v48 = vpack.c.bf16 %v227_v45, %v225_v44 }
  0x53   :  { %540 = vmatmul.bf16.gmra.mxu0 %v2373_v3  ;;  %580 = vmatmul.bf16.gmra.mxu2 %v2375_v1  ;;  %v2552_v15 = vpack.c.bf16 %v224_v2, %v222_v0  ;;  %v2595_v57 = vpack.c.bf16 %v228_v47, %v226_v54  ;;  %v1113_v0 = vld [vmem:[%s3017_s1 + $0xe8] sm:$0xff] }
  0x54   :  { %629 = vmatmul.bf16.gmra.mxu1 %v2377_v4  ;;  %1263 = vperm.xlu2 %2013, %v1113_v0  }
  0x56   :  { %669 = vmatmul.bf16.gmra.mxu3 %v2379_v5  ;;  %1273 = vperm.xlu1 %2012, %v1115_v23  }
  0x57   :  { %1268 = vperm.xlu0 %2011, %v1114_v27  }
  0x63   :  { %545 = vmatmul.bf16.gmra.mxu0 %v2431_v42  ;;  %585 = vmatmul.bf16.gmra.mxu2 %v2433_v43 }
  0x64   :  { %634 = vmatmul.bf16.gmra.mxu1 %v2435_v46  ;;  %v2539_v10 = vpop.permute.xlu2 %1138 }
  0x66   :  { %674 = vmatmul.bf16.gmra.mxu3 %v2437_v49 }
  0x6c   :  { %v2566_v28 = vpop.permute.xlu2 %1143 }
  0x73   :  { %550 = vmatmul.bf16.gmra.mxu0 %v2472_v17  ;;  %590 = vmatmul.bf16.gmra.mxu2 %v2474_v18 }
  0x74   :  { %639 = vmatmul.bf16.gmra.mxu1 %v2476_v8  ;;  %v2597_v62 = vpop.permute.xlu2 %1158 }
  0x76   :  { %679 = vmatmul.bf16.gmra.mxu3 %v2478_v19 }
  0x78   :  { %v2541_v11 = vpop.permute.xlu1 %1128  ;;  %v2556_v16 = vpop.permute.xlu0 %1118 }
  0x7c   :  { %v2610_v12 = vpop.permute.xlu2 %1173 }
  0x80   :  { %v2568_v29 = vpop.permute.xlu1 %1133  ;;  %v2587_v55 = vpop.permute.xlu0 %1123 }
  0x83   :  { %555 = vmatmul.bf16.gmra.mxu0 %v2546_v13  ;;  %595 = vmatmul.bf16.gmra.mxu2 %v2548_v6 }
  0x84   :  { %644 = vmatmul.bf16.gmra.mxu1 %v2550_v14  ;;  %v2618_v32 = vpop.permute.xlu2 %1188 }
  0x86   :  { %684 = vmatmul.bf16.gmra.mxu3 %v2552_v15 }
  0x88   :  { %v2599_v63 = vpop.permute.xlu1 %1153  ;;  %v2608_v2 = vpop.permute.xlu0 %1148 }
  0x90   :  { %v2612_v7 = vpop.permute.xlu1 %1168  ;;  %v2614_v30 = vpop.permute.xlu0 %1163 }
  0x93   :  { %560 = vmatmul.bf16.gmra.mxu0 %v2589_v26  ;;  %600 = vmatmul.bf16.gmra.mxu2 %v2591_v48 }
  0x94   :  { %649 = vmatmul.bf16.gmra.mxu1 %v2593_v56 }
  0x96   :  { %689 = vmatmul.bf16.gmra.mxu3 %v2595_v57 }
  0x98   :  { %v2620_v37 = vpop.permute.xlu1 %1183 }
  0x99   :  { %v2623_v45 = vpop.permute.xlu0 %1178 }
  0xa0   :  { %v526_v27 = vpop.f32.mrf.mxu0  ;;  %v2628_v53 = vpop.permute.xlu1 %1198 }
  0xa1   :  { %v615_v31 = vpop.f32.mrf.mxu1  ;;  %3036 = vst [vmem:[#allocation4_spill] sm:$0xff] %v2628_v53 }
  0xa2   :  { %v616_v38 = vadd.f32 %v615_v31, %v526_v27 }
  0xa3   :  { %703 = vmatmul.bf16.vlgmr.msrb.gmra.mxu2 %v2203_v20 }
  0xa4   :  { %v1276_v9 = vmul.f32 %v2556_v16, %v616_v38 }
  0xa6   :  { %792 = vmatmul.bf16.vlgmr.msrb.gmra.mxu3 %v2213_v24  ;;  %v566_v39 = vpop.f32.mrf.mxu2  ;;  %v2626_v24 = vpop.permute.xlu2 %1203 }
  0xa7   :  { %3035 = vst [vmem:[#allocation3_spill] sm:$0xff] %v2626_v24 }
  0xa8   :  { %v528_v50 = vpop.f32.mrf.mxu0 }
  0xa9   :  { %v655_v40 = vpop.f32.mrf.mxu3  ;;  %v617_v51 = vpop.f32.mrf.mxu1 }
  0xaa   :  { %v656_v41 = vadd.f32 %v655_v40, %v566_v39  ;;  %v618_v44 = vadd.f32 %v617_v51, %v528_v50  ;;  %v2640_v39 = vpop.permute.xlu0 %1193 }
  0xac   :  { %v1278_v22 = vmul.f32 %v2587_v55, %v618_v44  ;;  %v2631_v27 = vmul.f32 %v2628_v53, %v656_v41 }
  0xae   :  { %v568_v20 = vpop.f32.mrf.mxu2  ;;  %v1340_v52 = vpack.c.bf16 %v1278_v22, %v1276_v9 }
  0xb0   :  { %1412 = vmatmul.bf16.vlgmr.msrb.gmra.mxu0 %v1340_v52  ;;  %v531_v23 = vpop.f32.mrf.mxu0 }
  0xb1   :  { %v657_v54 = vpop.f32.mrf.mxu3  ;;  %v620_v0 = vpop.f32.mrf.mxu1 }
  0xb2   :  { %v658_v47 = vadd.f32 %v657_v54, %v568_v20  ;;  %v621_v40 = vadd.f32 %v620_v0, %v531_v23  ;;  %v2646_v38 = vpop.permute.xlu0 %1208 }
  0xb3   :  { %708 = vmatmul.bf16.gmra.mxu2 %v2265_v58  ;;  %3038 = vst [vmem:[#allocation6_spill] sm:$0xff] %v2646_v38 }
  0xb4   :  { %v2634_v31 = vmul.f32 %v2626_v24, %v658_v47  ;;  %v1280_v41 = vmul.f32 %v2541_v11, %v621_v40  ;;  %v2644_v47 = vpop.permute.xlu1 %1213 }
  0xb5   :  { %3037 = vst [vmem:[#allocation5_spill] sm:$0xff] %v2644_v47 }
  0xb6   :  { %797 = vmatmul.bf16.gmra.mxu3 %v2269_v60  ;;  %v571_v50 = vpop.f32.mrf.mxu2 }
  0xb8   :  { %v533_v44 = vpop.f32.mrf.mxu0 }
  0xb9   :  { %v660_v51 = vpop.f32.mrf.mxu3  ;;  %v622_v22 = vpop.f32.mrf.mxu1 }
  0xba   :  { %v661_v9 = vadd.f32 %v660_v51, %v571_v50  ;;  %v623_v20 = vadd.f32 %v622_v22, %v533_v44  ;;  %v2662_v53 = vpop.permute.xlu0 %1223 }
  0xbb   :  { %3040 = vst [vmem:[#allocation8_spill] sm:$0xff] %v2662_v53 }
  0xbc   :  { %v1282_v52 = vmul.f32 %v2568_v29, %v623_v20  ;;  %v2649_v50 = vmul.f32 %v2646_v38, %v661_v9 }
  0xbe   :  { %v573_v54 = vpop.f32.mrf.mxu2  ;;  %v1341_v58 = vpack.c.bf16 %v1282_v52, %v1280_v41 }
  0xc0   :  { %1417 = vmatmul.bf16.gmra.mxu0 %v1341_v58  ;;  %v536_v23 = vpop.f32.mrf.mxu0 }
  0xc1   :  { %v662_v60 = vpop.f32.mrf.mxu3  ;;  %v625_v0 = vpop.f32.mrf.mxu1 }
  0xc2   :  { %v663_v24 = vadd.f32 %v662_v60, %v573_v54  ;;  %v626_v44 = vadd.f32 %v625_v0, %v536_v23 }
  0xc3   :  { %713 = vmatmul.bf16.gmra.mxu2 %v2332_v33 }
  0xc4   :  { %v2652_v51 = vmul.f32 %v2644_v47, %v663_v24  ;;  %v1284_v58 = vmul.f32 %v2539_v10, %v626_v44  ;;  %v2660_v24 = vpop.permute.xlu2 %1218 }
  0xc5   :  { %3039 = vst [vmem:[#allocation7_spill] sm:$0xff] %v2660_v24 }
  0xc6   :  { %802 = vmatmul.bf16.gmra.mxu3 %v2336_v35  ;;  %v576_v22 = vpop.f32.mrf.mxu2 }
  0xc8   :  { %v538_v52 = vpop.f32.mrf.mxu0 }
  0xc9   :  { %v665_v41 = vpop.f32.mrf.mxu3  ;;  %v627_v54 = vpop.f32.mrf.mxu1 }
  0xca   :  { %v666_v20 = vadd.f32 %v665_v41, %v576_v22  ;;  %v628_v9 = vadd.f32 %v627_v54, %v538_v52 }
  0xcc   :  { %v1286_v60 = vmul.f32 %v2566_v28, %v628_v9  ;;  %v2665_v0 = vmul.f32 %v2660_v24, %v666_v20  ;;  %v2678_v24 = vpop.permute.xlu2 %1233 }
  0xcd   :  { %3042 = vst [vmem:[#allocation10_spill] sm:$0xff] %v2678_v24 }
  0xce   :  { %v578_v47 = vpop.f32.mrf.mxu2  ;;  %v1342_v33 = vpack.c.bf16 %v1286_v60, %v1284_v58 }
  0xd0   :  { %1422 = vmatmul.bf16.gmra.mxu0 %v1342_v33  ;;  %v541_v35 = vpop.f32.mrf.mxu0 }
  0xd1   :  { %v667_v38 = vpop.f32.mrf.mxu3  ;;  %v630_v23 = vpop.f32.mrf.mxu1 }
  0xd2   :  { %v668_v40 = vadd.f32 %v667_v38, %v578_v47  ;;  %v631_v41 = vadd.f32 %v630_v23, %v541_v35 }
  0xd3   :  { %718 = vmatmul.bf16.gmra.mxu2 %v2373_v3 }
  0xd4   :  { %v2668_v22 = vmul.f32 %v2662_v53, %v668_v40  ;;  %v1288_v9 = vmul.f32 %v2608_v2, %v631_v41  ;;  %v2676_v40 = vpop.permute.xlu1 %1228 }
  0xd5   :  { %3041 = vst [vmem:[#allocation9_spill] sm:$0xff] %v2676_v40 }
  0xd6   :  { %807 = vmatmul.bf16.gmra.mxu3 %v2377_v4  ;;  %v581_v52 = vpop.f32.mrf.mxu2 }
  0xd8   :  { %v543_v47 = vpop.f32.mrf.mxu0 }
  0xd9   :  { %v670_v54 = vpop.f32.mrf.mxu3  ;;  %v632_v58 = vpop.f32.mrf.mxu1 }
  0xda   :  { %v671_v38 = vadd.f32 %v670_v54, %v581_v52  ;;  %v633_v20 = vadd.f32 %v632_v58, %v543_v47 }
  0xdc   :  { %v1290_v60 = vmul.f32 %v2599_v63, %v633_v20  ;;  %v2681_v23 = vmul.f32 %v2676_v40, %v671_v38  ;;  %v2694_v40 = vpop.permute.xlu1 %1243 }
  0xdd   :  { %3044 = vst [vmem:[#allocation12_spill] sm:$0xff] %v2694_v40 }
  0xde   :  { %v583_v33 = vpop.f32.mrf.mxu2  ;;  %v1343_v3 = vpack.c.bf16 %v1290_v60, %v1288_v9 }
  0xe0   :  { %1427 = vmatmul.bf16.gmra.mxu0 %v1343_v3  ;;  %v546_v4 = vpop.f32.mrf.mxu0 }
  0xe1   :  { %v672_v53 = vpop.f32.mrf.mxu3  ;;  %v635_v35 = vpop.f32.mrf.mxu1 }
  0xe2   :  { %v673_v44 = vadd.f32 %v672_v53, %v583_v33  ;;  %v636_v54 = vadd.f32 %v635_v35, %v546_v4 }
  0xe3   :  { %723 = vmatmul.bf16.gmra.mxu2 %v2431_v42 }
  0xe4   :  { %v2684_v52 = vmul.f32 %v2678_v24, %v673_v44  ;;  %v1292_v60 = vmul.f32 %v2597_v62, %v636_v54  ;;  %v2692_v44 = vpop.permute.xlu0 %1238 }
  0xe5   :  { %3043 = vst [vmem:[#allocation11_spill] sm:$0xff] %v2692_v44 }
  0xe6   :  { %812 = vmatmul.bf16.gmra.mxu3 %v2435_v46  ;;  %v586_v47 = vpop.f32.mrf.mxu2 }
  0xe8   :  { %v548_v9 = vpop.f32.mrf.mxu0 }
  0xe9   :  { %v675_v58 = vpop.f32.mrf.mxu3  ;;  %v637_v20 = vpop.f32.mrf.mxu1 }
  0xea   :  { %v676_v53 = vadd.f32 %v675_v58, %v586_v47  ;;  %v638_v38 = vadd.f32 %v637_v20, %v548_v9 }
  0xec   :  { %v1294_v33 = vmul.f32 %v2614_v30, %v638_v38  ;;  %v2697_v35 = vmul.f32 %v2692_v44, %v676_v53  ;;  %v2710_v44 = vpop.permute.xlu0 %1253 }
  0xed   :  { %3046 = vst [vmem:[#allocation14_spill] sm:$0xff] %v2710_v44 }
  0xee   :  { %v588_v3 = vpop.f32.mrf.mxu2  ;;  %v1344_v42 = vpack.c.bf16 %v1294_v33, %v1292_v60 }
  0xf0   :  { %1432 = vmatmul.bf16.gmra.mxu0 %v1344_v42  ;;  %v551_v46 = vpop.f32.mrf.mxu0 }
  0xf1   :  { %v677_v24 = vpop.f32.mrf.mxu3  ;;  %v640_v4 = vpop.f32.mrf.mxu1 }
  0xf2   :  { %v678_v41 = vadd.f32 %v677_v24, %v588_v3  ;;  %v641_v58 = vadd.f32 %v640_v4, %v551_v46 }
  0xf3   :  { %728 = vmatmul.bf16.gmra.mxu2 %v2472_v17 }
  0xf4   :  { %v2700_v47 = vmul.f32 %v2694_v40, %v678_v41  ;;  %v1296_v33 = vmul.f32 %v2612_v7, %v641_v58  ;;  %v2708_v41 = vpop.permute.xlu2 %1248 }
  0xf5   :  { %3045 = vst [vmem:[#allocation13_spill] sm:$0xff] %v2708_v41 }
  0xf6   :  { %817 = vmatmul.bf16.gmra.mxu3 %v2476_v8  ;;  %v591_v9 = vpop.f32.mrf.mxu2 }
  0xf8   :  { %v553_v60 = vpop.f32.mrf.mxu0 }
  0xf9   :  { %v680_v20 = vpop.f32.mrf.mxu3  ;;  %v642_v38 = vpop.f32.mrf.mxu1 }
  0xfa   :  { %v681_v24 = vadd.f32 %v680_v20, %v591_v9  ;;  %v643_v53 = vadd.f32 %v642_v38, %v553_v60 }
  0xfc   :  { %v1298_v3 = vmul.f32 %v2610_v12, %v643_v53  ;;  %v2713_v4 = vmul.f32 %v2708_v41, %v681_v24  ;;  %v2726_v41 = vpop.permute.xlu2 %1263 }
  0xfd   :  { %3048 = vst [vmem:[#allocation16_spill] sm:$0xff] %v2726_v41 }
  0xfe   :  { %v593_v42 = vpop.f32.mrf.mxu2  ;;  %v1345_v17 = vpack.c.bf16 %v1298_v3, %v1296_v33 }
 0x100   :  { %1437 = vmatmul.bf16.gmra.mxu0 %v1345_v17  ;;  %v556_v8 = vpop.f32.mrf.mxu0 }
 0x101   :  { %v682_v40 = vpop.f32.mrf.mxu3  ;;  %v645_v46 = vpop.f32.mrf.mxu1 }
 0x102   :  { %v683_v54 = vadd.f32 %v682_v40, %v593_v42  ;;  %v646_v20 = vadd.f32 %v645_v46, %v556_v8 }
 0x103   :  { %733 = vmatmul.bf16.gmra.mxu2 %v2546_v13 }
 0x104   :  { %v2716_v9 = vmul.f32 %v2710_v44, %v683_v54  ;;  %v1300_v3 = vmul.f32 %v2623_v45, %v646_v20  ;;  %v2724_v54 = vpop.permute.xlu1 %1258 }
 0x105   :  { %3047 = vst [vmem:[#allocation15_spill] sm:$0xff] %v2724_v54 }
 0x106   :  { %822 = vmatmul.bf16.gmra.mxu3 %v2550_v14  ;;  %v596_v60 = vpop.f32.mrf.mxu2 }
 0x108   :  { %v558_v33 = vpop.f32.mrf.mxu0 }
 0x109   :  { %v685_v38 = vpop.f32.mrf.mxu3  ;;  %v647_v53 = vpop.f32.mrf.mxu1 }
 0x10a   :  { %v686_v40 = vadd.f32 %v685_v38, %v596_v60  ;;  %v648_v24 = vadd.f32 %v647_v53, %v558_v33 }
 0x10c   :  { %v1302_v42 = vmul.f32 %v2620_v37, %v648_v24  ;;  %v2729_v46 = vmul.f32 %v2724_v54, %v686_v40  ;;  %v2742_v54 = vpop.permute.xlu1 %1273 }
 0x10e   :  { %v598_v17 = vpop.f32.mrf.mxu2  ;;  %v1346_v13 = vpack.c.bf16 %v1302_v42, %v1300_v3 }
 0x110   :  { %1442 = vmatmul.bf16.gmra.mxu0 %v1346_v13  ;;  %v561_v14 = vpop.f32.mrf.mxu0 }
 0x111   :  { %v687_v44 = vpop.f32.mrf.mxu3  ;;  %v650_v8 = vpop.f32.mrf.mxu1 }
 0x112   :  { %v688_v58 = vadd.f32 %v687_v44, %v598_v17  ;;  %v651_v38 = vadd.f32 %v650_v8, %v561_v14 }
 0x113   :  { %738 = vmatmul.bf16.gmra.mxu2 %v2589_v26 }
 0x114   :  { %v2732_v60 = vmul.f32 %v2726_v41, %v688_v58  ;;  %v1304_v42 = vmul.f32 %v2618_v32, %v651_v38  ;;  %v2740_v58 = vpop.permute.xlu0 %1268 }
 0x116   :  { %827 = vmatmul.bf16.gmra.mxu3 %v2593_v56  ;;  %v601_v33 = vpop.f32.mrf.mxu2 }
 0x118   :  { %v563_v3 = vpop.f32.mrf.mxu0 }
 0x119   :  { %v690_v53 = vpop.f32.mrf.mxu3  ;;  %v652_v24 = vpop.f32.mrf.mxu1 }
 0x11a   :  { %v691_v44 = vadd.f32 %v690_v53, %v601_v33  ;;  %v653_v40 = vadd.f32 %v652_v24, %v563_v3 }
 0x11c   :  { %v1306_v17 = vmul.f32 %v2640_v39, %v653_v40  ;;  %v2745_v56 = vmul.f32 %v2740_v58, %v691_v44 }
 0x11e   :  { %v603_v13 = vpop.f32.mrf.mxu2  ;;  %v1347_v26 = vpack.c.bf16 %v1306_v17, %v1304_v42 }
 0x120   :  { %1447 = vmatmul.bf16.gmra.mxu0 %v1347_v26 }
 0x121   :  { %v692_v41 = vpop.f32.mrf.mxu3 }
 0x122   :  { %v693_v20 = vadd.f32 %v692_v41, %v603_v13 }
 0x123   :  { %743 = vmatmul.bf16.gmra.mxu2 %v2205_v21 }
 0x124   :  { %v2748_v14 = vmul.f32 %v2742_v54, %v693_v20  ;;  %v3049_v20 = vpack.c.bf16 %v2634_v31, %v2631_v27 }
 0x126   :  { %v1355_v8 = vpack.c.bf16 %v2748_v14, %v2745_v56  ;;  %832 = vmatmul.bf16.gmra.mxu3 %v2215_v25  ;;  %v704_v38 = vpop.f32.mrf.mxu2 }
 0x129   :  { %v793_v33 = vpop.f32.mrf.mxu3 }
 0x12a   :  { %v794_v3 = vadd.f32 %v793_v33, %v704_v38 }
 0x12c   :  { %v1277_v21 = vmul.f32 %v2556_v16, %v794_v3 }
 0x12d   :  { %v1413_v53 = vpop.f32.mrf.mxu0 }
 0x12e   :  { %v1493_v24 = vmax.f32 %v1413_v53, 0.0  ;;  %v706_v41 = vpop.f32.mrf.mxu2 }
 0x130   :  { %v1662_v40 = vpack.c.bf16 %v1493_v24, %v1493_v24  ;;  %1452 = vmatmul.bf16.gmra.mxu0 %v3049_v20 }
 0x131   :  { %v795_v42 = vpop.f32.mrf.mxu3 }
 0x132   :  { %v796_v44 = vadd.f32 %v795_v42, %v706_v41  ;;  %1694 = vst [vmem:[%s3020_s4] sm:$0xf] %v1662_v40 }
 0x133   :  { %748 = vmatmul.bf16.gmra.mxu2 %v2267_v59 }
 0x134   :  { %v1279_v25 = vmul.f32 %v2587_v55, %v796_v44 }
 0x135   :  { %v1415_v13 = vpop.f32.mrf.mxu0 }
 0x136   :  { %837 = vmatmul.bf16.gmra.mxu3 %v2271_v61  ;;  %v1525_v17 = vpack.c.bf16 %v1279_v25, %v1277_v21  ;;  %v1494_v26 = vmax.f32 %v1415_v13, 0.0  ;;  %v709_v38 = vpop.f32.mrf.mxu2  ;;  %v3050_v61 = vpack.c.bf16 %v2652_v51, %v2649_v50 }
 0x138   :  { %1549 = vmatmul.bf16.vlgmr.msrb.gmra.mxu1 %v1525_v17  ;;  %v1663_v27 = vpack.c.bf16 %v1494_v26, %v1494_v26 }
 0x139   :  { %v798_v33 = vpop.f32.mrf.mxu3 }
 0x13a   :  { %1695 = vst [vmem:[%s3020_s4 + $0x8] sm:$0xf] %v1663_v27  ;;  %v799_v31 = vadd.f32 %v798_v33, %v709_v38 }
 0x13c   :  { %v1281_v41 = vmul.f32 %v2541_v11, %v799_v31 }
 0x13d   :  { %v1418_v16 = vpop.f32.mrf.mxu0 }
 0x13e   :  { %v1495_v53 = vmax.f32 %v1418_v16, 0.0  ;;  %v711_v3 = vpop.f32.mrf.mxu2 }
 0x140   :  { %v1664_v24 = vpack.c.bf16 %v1495_v53, %v1495_v53  ;;  %1457 = vmatmul.bf16.gmra.mxu0 %v3050_v61 }
 0x141   :  { %v800_v55 = vpop.f32.mrf.mxu3 }
 0x142   :  { %v801_v59 = vadd.f32 %v800_v55, %v711_v3  ;;  %1696 = vst [vmem:[%s3020_s4 + $0x10] sm:$0xf] %v1664_v24 }
 0x143   :  { %753 = vmatmul.bf16.gmra.mxu2 %v2334_v34 }
 0x144   :  { %v1283_v42 = vmul.f32 %v2568_v29, %v801_v59 }
 0x145   :  { %v1420_v44 = vpop.f32.mrf.mxu0 }
 0x146   :  { %842 = vmatmul.bf16.gmra.mxu3 %v2338_v36  ;;  %v1526_v40 = vpack.c.bf16 %v1283_v42, %v1281_v41  ;;  %v1496_v20 = vmax.f32 %v1420_v44, 0.0  ;;  %v714_v21 = vpop.f32.mrf.mxu2  ;;  %v3051_v36 = vpack.c.bf16 %v2668_v22, %v2665_v0 }
 0x148   :  { %1554 = vmatmul.bf16.gmra.mxu1 %v1526_v40  ;;  %v1665_v50 = vpack.c.bf16 %v1496_v20, %v1496_v20 }
 0x149   :  { %v803_v25 = vpop.f32.mrf.mxu3 }
 0x14a   :  { %1697 = vst [vmem:[%s3020_s4 + $0x18] sm:$0xf] %v1665_v50  ;;  %v804_v51 = vadd.f32 %v803_v25, %v714_v21 }
 0x14c   :  { %v1285_v38 = vmul.f32 %v2539_v10, %v804_v51 }
 0x14d   :  { %v1423_v11 = vpop.f32.mrf.mxu0 }
 0x14e   :  { %v1497_v17 = vmax.f32 %v1423_v11, 0.0  ;;  %v716_v13 = vpop.f32.mrf.mxu2 }
 0x150   :  { %v1666_v26 = vpack.c.bf16 %v1497_v17, %v1497_v17  ;;  %1462 = vmatmul.bf16.gmra.mxu0 %v3051_v36 }
 0x151   :  { %v805_v29 = vpop.f32.mrf.mxu3 }
 0x152   :  { %v806_v34 = vadd.f32 %v805_v29, %v716_v13  ;;  %1698 = vst [vmem:[%s3020_s4 + $0x20] sm:$0xf] %v1666_v26 }
 0x153   :  { %758 = vmatmul.bf16.gmra.mxu2 %v2375_v1 }
 0x154   :  { %v1287_v33 = vmul.f32 %v2566_v28, %v806_v34 }
 0x155   :  { %v1425_v16 = vpop.f32.mrf.mxu0 }
 0x156   :  { %847 = vmatmul.bf16.gmra.mxu3 %v2379_v5  ;;  %v1527_v27 = vpack.c.bf16 %v1287_v33, %v1285_v38  ;;  %v1498_v31 = vmax.f32 %v1425_v16, 0.0  ;;  %v719_v53 = vpop.f32.mrf.mxu2  ;;  %v3052_v5 = vpack.c.bf16 %v2684_v52, %v2681_v23 }
 0x158   :  { %1559 = vmatmul.bf16.gmra.mxu1 %v1527_v27  ;;  %v1667_v0 = vpack.c.bf16 %v1498_v31, %v1498_v31 }
 0x159   :  { %v808_v3 = vpop.f32.mrf.mxu3 }
 0x15a   :  { %1699 = vst [vmem:[%s3020_s4 + $0x28] sm:$0xf] %v1667_v0  ;;  %v809_v22 = vadd.f32 %v808_v3, %v719_v53 }
 0x15c   :  { %v1289_v61 = vmul.f32 %v2608_v2, %v809_v22 }
 0x15d   :  { %v1428_v10 = vpop.f32.mrf.mxu0 }
 0x15e   :  { %v1499_v55 = vmax.f32 %v1428_v10, 0.0  ;;  %v721_v24 = vpop.f32.mrf.mxu2 }
 0x160   :  { %v1668_v59 = vpack.c.bf16 %v1499_v55, %v1499_v55  ;;  %1467 = vmatmul.bf16.gmra.mxu0 %v3052_v5 }
 0x161   :  { %v810_v28 = vpop.f32.mrf.mxu3 }
 0x162   :  { %v811_v1 = vadd.f32 %v810_v28, %v721_v24  ;;  %1700 = vst [vmem:[%s3020_s4 + $0x30] sm:$0xf] %v1668_v59 }
 0x163   :  { %763 = vmatmul.bf16.gmra.mxu2 %v2433_v43 }
 0x164   :  { %v1291_v41 = vmul.f32 %v2599_v63, %v811_v1 }
 0x165   :  { %v1430_v40 = vpop.f32.mrf.mxu0 }
 0x166   :  { %852 = vmatmul.bf16.gmra.mxu3 %v2437_v49  ;;  %v1528_v42 = vpack.c.bf16 %v1291_v41, %v1289_v61  ;;  %v1500_v44 = vmax.f32 %v1430_v40, 0.0  ;;  %v724_v20 = vpop.f32.mrf.mxu2  ;;  %v3053_v49 = vpack.c.bf16 %v2700_v47, %v2697_v35 }
 0x168   :  { %1564 = vmatmul.bf16.gmra.mxu1 %v1528_v42  ;;  %v1669_v23 = vpack.c.bf16 %v1500_v44, %v1500_v44 }
 0x169   :  { %v813_v21 = vpop.f32.mrf.mxu3 }
 0x16a   :  { %1701 = vst [vmem:[%s3020_s4 + $0x38] sm:$0xf] %v1669_v23  ;;  %v814_v52 = vadd.f32 %v813_v21, %v724_v20 }
 0x16c   :  { %v1293_v51 = vmul.f32 %v2597_v62, %v814_v52 }
 0x16d   :  { %v1433_v2 = vpop.f32.mrf.mxu0 }
 0x16e   :  { %v1501_v25 = vmax.f32 %v1433_v2, 0.0  ;;  %v726_v50 = vpop.f32.mrf.mxu2 }
 0x170   :  { %v1670_v11 = vpack.c.bf16 %v1501_v25, %v1501_v25  ;;  %1472 = vmatmul.bf16.gmra.mxu0 %v3053_v49 }
 0x171   :  { %v815_v63 = vpop.f32.mrf.mxu3 }
 0x172   :  { %v816_v43 = vadd.f32 %v815_v63, %v726_v50  ;;  %1702 = vst [vmem:[%s3020_s4 + $0x40] sm:$0xf] %v1670_v11 }
 0x173   :  { %768 = vmatmul.bf16.gmra.mxu2 %v2474_v18 }
 0x174   :  { %v1295_v17 = vmul.f32 %v2614_v30, %v816_v43 }
 0x175   :  { %v1435_v29 = vpop.f32.mrf.mxu0 }
 0x176   :  { %857 = vmatmul.bf16.gmra.mxu3 %v2478_v19  ;;  %v1529_v13 = vpack.c.bf16 %v1295_v17, %v1293_v51  ;;  %v1502_v26 = vmax.f32 %v1435_v29, 0.0  ;;  %v729_v34 = vpop.f32.mrf.mxu2  ;;  %v3054_v19 = vpack.c.bf16 %v2716_v9, %v2713_v4  ;;  %v3056_v17 = vld [vmem:[#allocation4_spill] sm:$0xff] }
 0x178   :  { %1569 = vmatmul.bf16.gmra.mxu1 %v1529_v13  ;;  %v1671_v35 = vpack.c.bf16 %v1502_v26, %v1502_v26  ;;  %v3057_v13 = vld [vmem:[#allocation3_spill] sm:$0xff] }
 0x179   :  { %v818_v36 = vpop.f32.mrf.mxu3 }
 0x17a   :  { %1703 = vst [vmem:[%s3020_s4 + $0x48] sm:$0xf] %v1671_v35  ;;  %v819_v47 = vadd.f32 %v818_v36, %v729_v34 }
 0x17c   :  { %v1297_v16 = vmul.f32 %v2612_v7, %v819_v47 }
 0x17d   :  { %v1438_v62 = vpop.f32.mrf.mxu0 }
 0x17e   :  { %v1503_v38 = vmax.f32 %v1438_v62, 0.0  ;;  %v731_v33 = vpop.f32.mrf.mxu2 }
 0x180   :  { %v1672_v27 = vpack.c.bf16 %v1503_v38, %v1503_v38  ;;  %1477 = vmatmul.bf16.gmra.mxu0 %v3054_v19 }
 0x181   :  { %v820_v30 = vpop.f32.mrf.mxu3 }
 0x182   :  { %v821_v18 = vadd.f32 %v820_v30, %v731_v33  ;;  %1704 = vst [vmem:[%s3020_s4 + $0x50] sm:$0xf] %v1672_v27 }
 0x183   :  { %773 = vmatmul.bf16.gmra.mxu2 %v2548_v6 }
 0x184   :  { %v1299_v31 = vmul.f32 %v2610_v12, %v821_v18 }
 0x185   :  { %v1440_v3 = vpop.f32.mrf.mxu0 }
 0x186   :  { %862 = vmatmul.bf16.gmra.mxu3 %v2552_v15  ;;  %v1530_v53 = vpack.c.bf16 %v1299_v31, %v1297_v16  ;;  %v1504_v0 = vmax.f32 %v1440_v3, 0.0  ;;  %v734_v10 = vpop.f32.mrf.mxu2  ;;  %v3055_v15 = vpack.c.bf16 %v2732_v60, %v2729_v46 }
 0x188   :  { %1574 = vmatmul.bf16.gmra.mxu1 %v1530_v53  ;;  %v1673_v4 = vpack.c.bf16 %v1504_v0, %v1504_v0 }
 0x189   :  { %v823_v22 = vpop.f32.mrf.mxu3 }
 0x18a   :  { %1705 = vst [vmem:[%s3020_s4 + $0x58] sm:$0xf] %v1673_v4  ;;  %v824_v9 = vadd.f32 %v823_v22, %v734_v10  ;;  %v3058_v4 = vld [vmem:[#allocation6_spill] sm:$0xff] }
 0x18c   :  { %v1301_v59 = vmul.f32 %v2623_v45, %v824_v9  ;;  %v3059_v9 = vld [vmem:[#allocation5_spill] sm:$0xff] }
 0x18d   :  { %v1443_v7 = vpop.f32.mrf.mxu0 }
 0x18e   :  { %v1505_v55 = vmax.f32 %v1443_v7, 0.0  ;;  %v736_v24 = vpop.f32.mrf.mxu2 }
 0x190   :  { %v1674_v28 = vpack.c.bf16 %v1505_v55, %v1505_v55  ;;  %1482 = vmatmul.bf16.gmra.mxu0 %v3055_v15 }
 0x191   :  { %v825_v12 = vpop.f32.mrf.mxu3 }
 0x192   :  { %v826_v6 = vadd.f32 %v825_v12, %v736_v24  ;;  %1706 = vst [vmem:[%s3020_s4 + $0x60] sm:$0xf] %v1674_v28 }
 0x193   :  { %778 = vmatmul.bf16.gmra.mxu2 %v2591_v48 }
 0x194   :  { %v1303_v1 = vmul.f32 %v2620_v37, %v826_v6 }
 0x195   :  { %v1445_v61 = vpop.f32.mrf.mxu0 }
 0x196   :  { %867 = vmatmul.bf16.gmra.mxu3 %v2595_v57  ;;  %v1531_v5 = vpack.c.bf16 %v1303_v1, %v1301_v59  ;;  %v1506_v41 = vmax.f32 %v1445_v61, 0.0  ;;  %v739_v42 = vpop.f32.mrf.mxu2 }
 0x198   :  { %1579 = vmatmul.bf16.gmra.mxu1 %v1531_v5  ;;  %v1675_v46 = vpack.c.bf16 %v1506_v41, %v1506_v41 }
 0x199   :  { %v828_v40 = vpop.f32.mrf.mxu3 }
 0x19a   :  { %1707 = vst [vmem:[%s3020_s4 + $0x68] sm:$0xf] %v1675_v46  ;;  %v829_v60 = vadd.f32 %v828_v40, %v739_v42 }
 0x19c   :  { %v1305_v57 = vmul.f32 %v2618_v32, %v829_v60 }
 0x19d   :  { %v1448_v45 = vpop.f32.mrf.mxu0 }
 0x19e   :  { %v1507_v44 = vmax.f32 %v1448_v45, 0.0  ;;  %v741_v20 = vpop.f32.mrf.mxu2 }
 0x1a0   :  { %v1676_v21 = vpack.c.bf16 %v1507_v44, %v1507_v44  ;;  %1487 = vmatmul.bf16.gmra.mxu0 %v1355_v8 }
 0x1a1   :  { %v830_v37 = vpop.f32.mrf.mxu3 }
 0x1a2   :  { %v831_v48 = vadd.f32 %v830_v37, %v741_v20  ;;  %1708 = vst [vmem:[%s3020_s4 + $0x70] sm:$0xf] %v1676_v21 }
 0x1a4   :  { %v1307_v23 = vmul.f32 %v2640_v39, %v831_v48  ;;  %v3060_v48 = vld [vmem:[#allocation7_spill] sm:$0xff] }
 0x1a5   :  { %v1450_v52 = vpop.f32.mrf.mxu0 }
 0x1a6   :  { %v1532_v2 = vpack.c.bf16 %v1307_v23, %v1305_v57  ;;  %v1508_v25 = vmax.f32 %v1450_v52, 0.0  ;;  %v744_v50 = vpop.f32.mrf.mxu2  ;;  %v3061_v23 = vld [vmem:[#allocation8_spill] sm:$0xff] }
 0x1a8   :  { %1584 = vmatmul.bf16.gmra.mxu1 %v1532_v2  ;;  %v1677_v11 = vpack.c.bf16 %v1508_v25, %v1508_v25 }
 0x1a9   :  { %v833_v63 = vpop.f32.mrf.mxu3 }
 0x1aa   :  { %1709 = vst [vmem:[%s3020_s4 + $0x78] sm:$0xf] %v1677_v11  ;;  %v834_v14 = vadd.f32 %v833_v63, %v744_v50 }
 0x1ac   :  { %v1309_v39 = vmul.f32 %v3056_v17, %v834_v14 }
 0x1ad   :  { %v1453_v56 = vpop.f32.mrf.mxu0 }
 0x1ae   :  { %v1509_v32 = vmax.f32 %v1453_v56, 0.0  ;;  %v746_v8 = vpop.f32.mrf.mxu2 }
 0x1b0   :  { %v1678_v49 = vpack.c.bf16 %v1509_v32, %v1509_v32 }
 0x1b1   :  { %v835_v43 = vpop.f32.mrf.mxu3 }
 0x1b2   :  { %v836_v51 = vadd.f32 %v835_v43, %v746_v8  ;;  %1710 = vst [vmem:[%s3020_s4 + $0x80] sm:$0xf] %v1678_v49 }
 0x1b4   :  { %v1311_v29 = vmul.f32 %v3057_v13, %v836_v51 }
 0x1b5   :  { %v1550_v26 = vpop.f32.mrf.mxu1  ;;  %v1455_v35 = vpop.f32.mrf.mxu0 }
 0x1b6   :  { %v1630_v34 = vmax.f32 %v1550_v26, 0.0  ;;  %v1533_v36 = vpack.c.bf16 %v1311_v29, %v1309_v39  ;;  %v1510_v47 = vmax.f32 %v1455_v35, 0.0  ;;  %v749_v38 = vpop.f32.mrf.mxu2  ;;  %v3062_v35 = vld [vmem:[#allocation9_spill] sm:$0xff] }
 0x1b8   :  { %v1726_v62 = vpack.c.bf16 %v1630_v34, %v1630_v34  ;;  %1589 = vmatmul.bf16.gmra.mxu1 %v1533_v36  ;;  %v1679_v30 = vpack.c.bf16 %v1510_v47, %v1510_v47  ;;  %v3063_v47 = vld [vmem:[#allocation10_spill] sm:$0xff] }
 0x1b9   :  { %v838_v33 = vpop.f32.mrf.mxu3 }
 0x1ba   :  { %1758 = vst [vmem:[%s3020_s4 + $0x4] sm:$0xf] %v1726_v62  ;;  %v839_v16 = vadd.f32 %v838_v33, %v749_v38 }
 0x1bb   :  { %1711 = vst [vmem:[%s3020_s4 + $0x88] sm:$0xf] %v1679_v30 }
 0x1bc   :  { %v1313_v7 = vmul.f32 %v3058_v4, %v839_v16 }
 0x1bd   :  { %v1552_v27 = vpop.f32.mrf.mxu1  ;;  %v1458_v19 = vpop.f32.mrf.mxu0 }
 0x1be   :  { %v1631_v18 = vmax.f32 %v1552_v27, 0.0  ;;  %v1511_v53 = vmax.f32 %v1458_v19, 0.0  ;;  %v751_v3 = vpop.f32.mrf.mxu2 }
 0x1c0   :  { %v1727_v31 = vpack.c.bf16 %v1631_v18, %v1631_v18  ;;  %v1680_v10 = vpack.c.bf16 %v1511_v53, %v1511_v53 }
 0x1c1   :  { %v840_v0 = vpop.f32.mrf.mxu3 }
 0x1c2   :  { %1759 = vst [vmem:[%s3020_s4 + $0xc] sm:$0xf] %v1727_v31  ;;  %v841_v22 = vadd.f32 %v840_v0, %v751_v3 }
 0x1c3   :  { %1712 = vst [vmem:[%s3020_s4 + $0x90] sm:$0xf] %v1680_v10 }
 0x1c4   :  { %v1315_v55 = vmul.f32 %v3059_v9, %v841_v22 }
 0x1c5   :  { %v1555_v24 = vpop.f32.mrf.mxu1  ;;  %v1460_v6 = vpop.f32.mrf.mxu0 }
 0x1c6   :  { %v1632_v12 = vmax.f32 %v1555_v24, 0.0  ;;  %v1534_v28 = vpack.c.bf16 %v1315_v55, %v1313_v7  ;;  %v1512_v59 = vmax.f32 %v1460_v6, 0.0  ;;  %v754_v1 = vpop.f32.mrf.mxu2  ;;  %v3064_v6 = vld [vmem:[#allocation11_spill] sm:$0xff] }
 0x1c8   :  { %v1728_v15 = vpack.c.bf16 %v1632_v12, %v1632_v12  ;;  %1594 = vmatmul.bf16.gmra.mxu1 %v1534_v28  ;;  %v1681_v61 = vpack.c.bf16 %v1512_v59, %v1512_v59  ;;  %v3065_v59 = vld [vmem:[#allocation12_spill] sm:$0xff] }
 0x1c9   :  { %v843_v5 = vpop.f32.mrf.mxu3 }
 0x1ca   :  { %1760 = vst [vmem:[%s3020_s4 + $0x14] sm:$0xf] %v1728_v15  ;;  %v844_v46 = vadd.f32 %v843_v5, %v754_v1 }
 0x1cb   :  { %1713 = vst [vmem:[%s3020_s4 + $0x98] sm:$0xf] %v1681_v61 }
 0x1cc   :  { %v1317_v57 = vmul.f32 %v3060_v48, %v844_v46 }
 0x1cd   :  { %v1557_v41 = vpop.f32.mrf.mxu1  ;;  %v1463_v40 = vpop.f32.mrf.mxu0 }
 0x1ce   :  { %v1633_v42 = vmax.f32 %v1557_v41, 0.0  ;;  %v1513_v60 = vmax.f32 %v1463_v40, 0.0  ;;  %v756_v44 = vpop.f32.mrf.mxu2 }
 0x1d0   :  { %v1729_v45 = vpack.c.bf16 %v1633_v42, %v1633_v42  ;;  %v1682_v37 = vpack.c.bf16 %v1513_v60, %v1513_v60 }
 0x1d1   :  { %v845_v20 = vpop.f32.mrf.mxu3 }
 0x1d2   :  { %1761 = vst [vmem:[%s3020_s4 + $0x1c] sm:$0xf] %v1729_v45  ;;  %v846_v21 = vadd.f32 %v845_v20, %v756_v44 }
 0x1d3   :  { %1714 = vst [vmem:[%s3020_s4 + $0xa0] sm:$0xf] %v1682_v37 }
 0x1d4   :  { %v1319_v2 = vmul.f32 %v3061_v23, %v846_v21 }
 0x1d5   :  { %v1560_v52 = vpop.f32.mrf.mxu1  ;;  %v1465_v63 = vpop.f32.mrf.mxu0 }
 0x1d6   :  { %v1634_v25 = vmax.f32 %v1560_v52, 0.0  ;;  %v1535_v50 = vpack.c.bf16 %v1319_v2, %v1317_v57  ;;  %v1514_v56 = vmax.f32 %v1465_v63, 0.0  ;;  %v759_v14 = vpop.f32.mrf.mxu2  ;;  %v3066_v63 = vld [vmem:[#allocation13_spill] sm:$0xff] }
 0x1d8   :  { %v1730_v11 = vpack.c.bf16 %v1634_v25, %v1634_v25  ;;  %1599 = vmatmul.bf16.gmra.mxu1 %v1535_v50  ;;  %v1683_v8 = vpack.c.bf16 %v1514_v56, %v1514_v56  ;;  %v3067_v56 = vld [vmem:[#allocation14_spill] sm:$0xff] }
 0x1d9   :  { %v848_v32 = vpop.f32.mrf.mxu3 }
 0x1da   :  { %1762 = vst [vmem:[%s3020_s4 + $0x24] sm:$0xf] %v1730_v11  ;;  %v849_v17 = vadd.f32 %v848_v32, %v759_v14 }
 0x1db   :  { %1715 = vst [vmem:[%s3020_s4 + $0xa8] sm:$0xf] %v1683_v8 }
 0x1dc   :  { %v1321_v62 = vmul.f32 %v3062_v35, %v849_v17 }
 0x1dd   :  { %v1562_v43 = vpop.f32.mrf.mxu1  ;;  %v1468_v51 = vpop.f32.mrf.mxu0 }
 0x1de   :  { %v1635_v49 = vmax.f32 %v1562_v43, 0.0  ;;  %v1515_v13 = vmax.f32 %v1468_v51, 0.0  ;;  %v761_v29 = vpop.f32.mrf.mxu2 }
 0x1e0   :  { %v1731_v39 = vpack.c.bf16 %v1635_v49, %v1635_v49  ;;  %v1684_v34 = vpack.c.bf16 %v1515_v13, %v1515_v13 }
 0x1e1   :  { %v850_v26 = vpop.f32.mrf.mxu3 }
 0x1e2   :  { %1763 = vst [vmem:[%s3020_s4 + $0x2c] sm:$0xf] %v1731_v39  ;;  %v851_v36 = vadd.f32 %v850_v26, %v761_v29 }
 0x1e3   :  { %1716 = vst [vmem:[%s3020_s4 + $0xb0] sm:$0xf] %v1684_v34 }
 0x1e4   :  { %v1323_v38 = vmul.f32 %v3063_v47, %v851_v36 }
 0x1e5   :  { %v1565_v33 = vpop.f32.mrf.mxu1  ;;  %v1470_v18 = vpop.f32.mrf.mxu0 }
 0x1e6   :  { %v1636_v30 = vmax.f32 %v1565_v33, 0.0  ;;  %v1536_v27 = vpack.c.bf16 %v1323_v38, %v1321_v62  ;;  %v1516_v16 = vmax.f32 %v1470_v18, 0.0  ;;  %v764_v31 = vpop.f32.mrf.mxu2  ;;  %v3068_v18 = vld [vmem:[#allocation15_spill] sm:$0xff] }
 0x1e8   :  { %v1732_v19 = vpack.c.bf16 %v1636_v30, %v1636_v30  ;;  %1604 = vmatmul.bf16.gmra.mxu1 %v1536_v27  ;;  %v1685_v3 = vpack.c.bf16 %v1516_v16, %v1516_v16  ;;  %v3069_v16 = vld [vmem:[#allocation16_spill] sm:$0xff] }
 0x1e9   :  { %v853_v53 = vpop.f32.mrf.mxu3 }
 0x1ea   :  { %1764 = vst [vmem:[%s3020_s4 + $0x34] sm:$0xf] %v1732_v19  ;;  %v854_v4 = vadd.f32 %v853_v53, %v764_v31 }
 0x1eb   :  { %1717 = vst [vmem:[%s3020_s4 + $0xb8] sm:$0xf] %v1685_v3 }
 0x1ec   :  { %v1325_v15 = vmul.f32 %v3064_v6, %v854_v4 }
 0x1ed   :  { %v1567_v0 = vpop.f32.mrf.mxu1  ;;  %v1473_v22 = vpop.f32.mrf.mxu0 }
 0x1ee   :  { %v1637_v10 = vmax.f32 %v1567_v0, 0.0  ;;  %v1517_v9 = vmax.f32 %v1473_v22, 0.0  ;;  %v766_v55 = vpop.f32.mrf.mxu2 }
 0x1f0   :  { %v1733_v7 = vpack.c.bf16 %v1637_v10, %v1637_v10  ;;  %v1686_v12 = vpack.c.bf16 %v1517_v9, %v1517_v9 }
 0x1f1   :  { %v855_v24 = vpop.f32.mrf.mxu3 }
 0x1f2   :  { %1765 = vst [vmem:[%s3020_s4 + $0x3c] sm:$0xf] %v1733_v7  ;;  %v856_v28 = vadd.f32 %v855_v24, %v766_v55 }
 0x1f3   :  { %1718 = vst [vmem:[%s3020_s4 + $0xc0] sm:$0xf] %v1686_v12 }
 0x1f4   :  { %v1327_v1 = vmul.f32 %v3065_v59, %v856_v28 }
 0x1f5   :  { %v1570_v5 = vpop.f32.mrf.mxu1  ;;  %v1475_v42 = vpop.f32.mrf.mxu0 }
 0x1f6   :  { %v1638_v61 = vmax.f32 %v1570_v5, 0.0  ;;  %v1537_v41 = vpack.c.bf16 %v1327_v1, %v1325_v15  ;;  %v1518_v46 = vmax.f32 %v1475_v42, 0.0  ;;  %v769_v45 = vpop.f32.mrf.mxu2 }
 0x1f8   :  { %v1734_v40 = vpack.c.bf16 %v1638_v61, %v1638_v61  ;;  %1609 = vmatmul.bf16.gmra.mxu1 %v1537_v41  ;;  %v1687_v44 = vpack.c.bf16 %v1518_v46, %v1518_v46 }
 0x1f9   :  { %v858_v60 = vpop.f32.mrf.mxu3 }
 0x1fa   :  { %1766 = vst [vmem:[%s3020_s4 + $0x44] sm:$0xf] %v1734_v40  ;;  %v859_v48 = vadd.f32 %v858_v60, %v769_v45 }
 0x1fb   :  { %1719 = vst [vmem:[%s3020_s4 + $0xc8] sm:$0xf] %v1687_v44 }
 0x1fc   :  { %v1329_v11 = vmul.f32 %v3066_v63, %v859_v48 }
 0x1fd   :  { %v1572_v20 = vpop.f32.mrf.mxu1  ;;  %v1478_v21 = vpop.f32.mrf.mxu0 }
 0x1fe   :  { %v1639_v37 = vmax.f32 %v1572_v20, 0.0  ;;  %v1519_v23 = vmax.f32 %v1478_v21, 0.0  ;;  %v771_v2 = vpop.f32.mrf.mxu2 }
 0x200   :  { %v1735_v57 = vpack.c.bf16 %v1639_v37, %v1639_v37  ;;  %v1688_v25 = vpack.c.bf16 %v1519_v23, %v1519_v23 }
 0x201   :  { %v860_v52 = vpop.f32.mrf.mxu3 }
 0x202   :  { %1767 = vst [vmem:[%s3020_s4 + $0x4c] sm:$0xf] %v1735_v57  ;;  %v861_v50 = vadd.f32 %v860_v52, %v771_v2 }
 0x203   :  { %1720 = vst [vmem:[%s3020_s4 + $0xd0] sm:$0xf] %v1688_v25 }
 0x204   :  { %v1331_v14 = vmul.f32 %v3067_v56, %v861_v50 }
 0x205   :  { %v1575_v32 = vpop.f32.mrf.mxu1  ;;  %v1480_v49 = vpop.f32.mrf.mxu0 }
 0x206   :  { %v1640_v8 = vmax.f32 %v1575_v32, 0.0  ;;  %v1538_v43 = vpack.c.bf16 %v1331_v14, %v1329_v11  ;;  %v1520_v17 = vmax.f32 %v1480_v49, 0.0  ;;  %v774_v39 = vpop.f32.mrf.mxu2 }
 0x208   :  { %v1736_v51 = vpack.c.bf16 %v1640_v8, %v1640_v8  ;;  %1614 = vmatmul.bf16.gmra.mxu1 %v1538_v43  ;;  %v1689_v29 = vpack.c.bf16 %v1520_v17, %v1520_v17 }
 0x209   :  { %v863_v13 = vpop.f32.mrf.mxu3 }
 0x20a   :  { %1768 = vst [vmem:[%s3020_s4 + $0x54] sm:$0xf] %v1736_v51  ;;  %v864_v35 = vadd.f32 %v863_v13, %v774_v39 }
 0x20b   :  { %1721 = vst [vmem:[%s3020_s4 + $0xd8] sm:$0xf] %v1689_v29 }
 0x20c   :  { %v1333_v19 = vmul.f32 %v3068_v18, %v864_v35 }
 0x20d   :  { %v1577_v26 = vpop.f32.mrf.mxu1  ;;  %v1483_v36 = vpop.f32.mrf.mxu0 }
 0x20e   :  { %v1641_v34 = vmax.f32 %v1577_v26, 0.0  ;;  %v1521_v47 = vmax.f32 %v1483_v36, 0.0  ;;  %v776_v38 = vpop.f32.mrf.mxu2 }
 0x210   :  { %v1737_v62 = vpack.c.bf16 %v1641_v34, %v1641_v34  ;;  %v1690_v30 = vpack.c.bf16 %v1521_v47, %v1521_v47 }
 0x211   :  { %v865_v33 = vpop.f32.mrf.mxu3 }
 0x212   :  { %1769 = vst [vmem:[%s3020_s4 + $0x5c] sm:$0xf] %v1737_v62  ;;  %v866_v27 = vadd.f32 %v865_v33, %v776_v38 }
 0x213   :  { %1722 = vst [vmem:[%s3020_s4 + $0xe0] sm:$0xf] %v1690_v30 }
 0x214   :  { %v1335_v31 = vmul.f32 %v3069_v16, %v866_v27 }
 0x215   :  { %v1580_v53 = vpop.f32.mrf.mxu1  ;;  %v1485_v10 = vpop.f32.mrf.mxu0 }
 0x216   :  { %v1642_v3 = vmax.f32 %v1580_v53, 0.0  ;;  %v1539_v0 = vpack.c.bf16 %v1335_v31, %v1333_v19  ;;  %v1522_v4 = vmax.f32 %v1485_v10, 0.0  ;;  %v779_v7 = vpop.f32.mrf.mxu2 }
 0x218   :  { %v1738_v22 = vpack.c.bf16 %v1642_v3, %v1642_v3  ;;  %1619 = vmatmul.bf16.gmra.mxu1 %v1539_v0  ;;  %v1691_v55 = vpack.c.bf16 %v1522_v4, %v1522_v4 }
 0x219   :  { %v868_v9 = vpop.f32.mrf.mxu3 }
 0x21a   :  { %1770 = vst [vmem:[%s3020_s4 + $0x64] sm:$0xf] %v1738_v22  ;;  %v869_v6 = vadd.f32 %v868_v9, %v779_v7 }
 0x21b   :  { %1723 = vst [vmem:[%s3020_s4 + $0xe8] sm:$0xf] %v1691_v55 }
 0x21c   :  { %v1337_v42 = vmul.f32 %v2740_v58, %v869_v6 }
 0x21d   :  { %v1582_v24 = vpop.f32.mrf.mxu1  ;;  %v1488_v28 = vpop.f32.mrf.mxu0 }
 0x21e   :  { %v1643_v12 = vmax.f32 %v1582_v24, 0.0  ;;  %v1523_v59 = vmax.f32 %v1488_v28, 0.0  ;;  %v781_v1 = vpop.f32.mrf.mxu2 }
 0x220   :  { %v1739_v15 = vpack.c.bf16 %v1643_v12, %v1643_v12  ;;  %v1692_v61 = vpack.c.bf16 %v1523_v59, %v1523_v59 }
 0x221   :  { %v870_v5 = vpop.f32.mrf.mxu3 }
 0x222   :  { %1771 = vst [vmem:[%s3020_s4 + $0x6c] sm:$0xf] %v1739_v15  ;;  %v871_v41 = vadd.f32 %v870_v5, %v781_v1 }
 0x223   :  { %1724 = vst [vmem:[%s3020_s4 + $0xf0] sm:$0xf] %v1692_v61 }
 0x224   :  { %v1339_v40 = vmul.f32 %v2742_v54, %v871_v41 }
 0x225   :  { %v1585_v46 = vpop.f32.mrf.mxu1  ;;  %v1490_v44 = vpop.f32.mrf.mxu0 }
 0x226   :  { %v1644_v45 = vmax.f32 %v1585_v46, 0.0  ;;  %v1540_v60 = vpack.c.bf16 %v1339_v40, %v1337_v42  ;;  %v1524_v37 = vmax.f32 %v1490_v44, 0.0 }
 0x228   :  { %v1740_v20 = vpack.c.bf16 %v1644_v45, %v1644_v45  ;;  %1624 = vmatmul.bf16.gmra.mxu1 %v1540_v60  ;;  %v1693_v21 = vpack.c.bf16 %v1524_v37, %v1524_v37 }
 0x22a   :  { %1772 = vst [vmem:[%s3020_s4 + $0x74] sm:$0xf] %v1740_v20 }
 0x22b   :  { %1725 = vst [vmem:[%s3020_s4 + $0xf8] sm:$0xf] %v1693_v21 }
 0x22d   :  { %v1587_v58 = vpop.f32.mrf.mxu1 }
 0x22e   :  { %v1645_v48 = vmax.f32 %v1587_v58, 0.0 }
 0x230   :  { %v1741_v57 = vpack.c.bf16 %v1645_v48, %v1645_v48 }
 0x232   :  { %1773 = vst [vmem:[%s3020_s4 + $0x7c] sm:$0xf] %v1741_v57 }
 0x235   :  { %v1590_v54 = vpop.f32.mrf.mxu1 }
 0x236   :  { %v1646_v23 = vmax.f32 %v1590_v54, 0.0 }
 0x238   :  { %v1742_v2 = vpack.c.bf16 %v1646_v23, %v1646_v23 }
 0x23a   :  { %1774 = vst [vmem:[%s3020_s4 + $0x84] sm:$0xf] %v1742_v2 }
 0x23d   :  { %v1592_v52 = vpop.f32.mrf.mxu1 }
 0x23e   :  { %v1647_v25 = vmax.f32 %v1592_v52, 0.0 }
 0x240   :  { %v1743_v50 = vpack.c.bf16 %v1647_v25, %v1647_v25 }
 0x242   :  { %1775 = vst [vmem:[%s3020_s4 + $0x8c] sm:$0xf] %v1743_v50 }
 0x245   :  { %v1595_v63 = vpop.f32.mrf.mxu1 }
 0x246   :  { %v1648_v11 = vmax.f32 %v1595_v63, 0.0 }
 0x248   :  { %v1744_v56 = vpack.c.bf16 %v1648_v11, %v1648_v11 }
 0x24a   :  { %1776 = vst [vmem:[%s3020_s4 + $0x94] sm:$0xf] %v1744_v56 }
 0x24d   :  { %v1597_v14 = vpop.f32.mrf.mxu1 }
 0x24e   :  { %v1649_v32 = vmax.f32 %v1597_v14, 0.0 }
 0x250   :  { %v1745_v8 = vpack.c.bf16 %v1649_v32, %v1649_v32 }
 0x252   :  { %1777 = vst [vmem:[%s3020_s4 + $0x9c] sm:$0xf] %v1745_v8 }
 0x255   :  { %v1600_v43 = vpop.f32.mrf.mxu1 }
 0x256   :  { %v1650_v49 = vmax.f32 %v1600_v43, 0.0 }
 0x258   :  { %v1746_v51 = vpack.c.bf16 %v1650_v49, %v1650_v49 }
 0x25a   :  { %1778 = vst [vmem:[%s3020_s4 + $0xa4] sm:$0xf] %v1746_v51 }
 0x25d   :  { %v1602_v17 = vpop.f32.mrf.mxu1 }
 0x25e   :  { %v1651_v39 = vmax.f32 %v1602_v17, 0.0 }
 0x260   :  { %v1747_v13 = vpack.c.bf16 %v1651_v39, %v1651_v39 }
 0x262   :  { %1779 = vst [vmem:[%s3020_s4 + $0xac] sm:$0xf] %v1747_v13 }
 0x265   :  { %v1605_v29 = vpop.f32.mrf.mxu1 }
 0x266   :  { %v1652_v26 = vmax.f32 %v1605_v29, 0.0 }
 0x268   :  { %v1748_v34 = vpack.c.bf16 %v1652_v26, %v1652_v26 }
 0x26a   :  { %1780 = vst [vmem:[%s3020_s4 + $0xb4] sm:$0xf] %v1748_v34 }
 0x26d   :  { %v1607_v36 = vpop.f32.mrf.mxu1 }
 0x26e   :  { %v1653_v35 = vmax.f32 %v1607_v36, 0.0 }
 0x270   :  { %v1749_v62 = vpack.c.bf16 %v1653_v35, %v1653_v35 }
 0x272   :  { %1781 = vst [vmem:[%s3020_s4 + $0xbc] sm:$0xf] %v1749_v62 }
 0x275   :  { %v1610_v47 = vpop.f32.mrf.mxu1 }
 0x276   :  { %v1654_v38 = vmax.f32 %v1610_v47, 0.0 }
 0x278   :  { %v1750_v33 = vpack.c.bf16 %v1654_v38, %v1654_v38 }
 0x27a   :  { %1782 = vst [vmem:[%s3020_s4 + $0xc4] sm:$0xf] %v1750_v33 }
 0x27d   :  { %v1612_v30 = vpop.f32.mrf.mxu1 }
 0x27e   :  { %v1655_v27 = vmax.f32 %v1612_v30, 0.0 }
 0x280   :  { %v1751_v18 = vpack.c.bf16 %v1655_v27, %v1655_v27 }
 0x282   :  { %1783 = vst [vmem:[%s3020_s4 + $0xcc] sm:$0xf] %v1751_v18 }
 0x285   :  { %v1615_v19 = vpop.f32.mrf.mxu1 }
 0x286   :  { %v1656_v16 = vmax.f32 %v1615_v19, 0.0 }
 0x288   :  { %v1752_v31 = vpack.c.bf16 %v1656_v16, %v1656_v16 }
 0x28a   :  { %1784 = vst [vmem:[%s3020_s4 + $0xd4] sm:$0xf] %v1752_v31 }
 0x28d   :  { %v1617_v53 = vpop.f32.mrf.mxu1 }
 0x28e   :  { %v1657_v3 = vmax.f32 %v1617_v53, 0.0 }
 0x290   :  { %v1753_v0 = vpack.c.bf16 %v1657_v3, %v1657_v3 }
 0x292   :  { %1785 = vst [vmem:[%s3020_s4 + $0xdc] sm:$0xf] %v1753_v0 }
 0x295   :  { %v1620_v10 = vpop.f32.mrf.mxu1 }
 0x296   :  { %v1658_v22 = vmax.f32 %v1620_v10, 0.0 }
 0x298   :  { %v1754_v4 = vpack.c.bf16 %v1658_v22, %v1658_v22 }
 0x29a   :  { %1786 = vst [vmem:[%s3020_s4 + $0xe4] sm:$0xf] %v1754_v4 }
 0x29d   :  { %v1622_v7 = vpop.f32.mrf.mxu1 }
 0x29e   :  { %v1659_v9 = vmax.f32 %v1622_v7, 0.0 }
 0x2a0   :  { %v1755_v55 = vpack.c.bf16 %v1659_v9, %v1659_v9 }
 0x2a2   :  { %1787 = vst [vmem:[%s3020_s4 + $0xec] sm:$0xf] %v1755_v55 }
 0x2a5   :  { %v1625_v24 = vpop.f32.mrf.mxu1 }
 0x2a6   :  { %v1660_v12 = vmax.f32 %v1625_v24, 0.0 }
 0x2a8   :  { %v1756_v28 = vpack.c.bf16 %v1660_v12, %v1660_v12 }
 0x2aa   :  { %1788 = vst [vmem:[%s3020_s4 + $0xf4] sm:$0xf] %v1756_v28 }
 0x2ad   :  { %v1627_v6 = vpop.f32.mrf.mxu1 }
 0x2ae   :  { %v1661_v15 = vmax.f32 %v1627_v6, 0.0 }
 0x2b0   :  { %v1757_v59 = vpack.c.bf16 %v1661_v15, %v1661_v15 }
 0x2b2   :  { %1789 = vst [vmem:[%s3020_s4 + $0xfc] sm:$0xf] %v1757_v59 }

</bundles_post_ra>
